<compile_context>
chip_gen: v7x
topology: tpu7x:2x2x1
jax: 0.10.0
libtpu: 0.0.40
codegen_flags: <defaults>
</compile_context>

<pallas_src>
import math
import functools

import numpy as np
import jax
import jax.numpy as jnp
from jax import lax
from jax.experimental import pallas as pl
from jax.experimental.pallas import tpu as pltpu

SCALE_SIZE = (4, 4)


def _pool_matrix_np(H, W, oh, ow):
    """(oh*ow, H*W) matrix reproducing nn.AdaptiveAvgPool2d((oh, ow)) bins."""
    P = np.zeros((oh * ow, H * W), dtype=np.float32)
    for i in range(oh):
        r0, r1 = (i * H) // oh, math.ceil((i + 1) * H / oh)
        for j in range(ow):
            c0, c1 = (j * W) // ow, math.ceil((j + 1) * W / ow)
            w = 1.0 / ((r1 - r0) * (c1 - c0))
            for r in range(r0, r1):
                for c in range(c0, c1):
                    P[i * ow + j, r * W + c] = w
    return P


def _interleaved_pool_matrix(H, W, C, oh, ow):
    """(H*W*C, C*S) matrix: pooled[b, c*S+s] = sum_k x_flat[b,k] * M[k, c*S+s]
    where x_flat is the natural NHWC flattening (lane k = pixel*C + channel)."""
    P = _pool_matrix_np(H, W, oh, ow)          # (S, H*W)
    S = oh * ow
    M = np.zeros((H * W * C, C * S), dtype=np.float32)
    for c in range(C):
        M[c::C, c * S:(c + 1) * S] = P.T
    return jnp.asarray(M)


def _gelu_exact(x):
    """Exact (erf-based) GELU, Abramowitz-Stegun 7.1.26 erf (|err| <= 1.5e-7)."""
    z = x * 0.7071067811865476
    a = jnp.abs(z)
    den = 1.0 + 0.3275911 * a
    t = pl.reciprocal(den, approx=True)
    t = t * (2.0 - den * t)                    # one Newton step -> ~f32 accurate
    poly = t * (0.254829592 + t * (-0.284496736 + t * (1.421413741 +
           t * (-1.453152027 + t * 1.061405429))))
    tau = poly * jnp.exp(-a * a)               # erfc(|z|)
    one_plus_erf = jnp.where(x >= 0, 2.0 - tau, tau)
    return 0.5 * x * one_plus_erf


def _cf_kernel(x_ref, p_ref, o_ref, *, C, S, scale):
    TB, L = x_ref.shape                        # L = H*W*C, lane-dense
    x = x_ref[...].astype(jnp.float32)         # (TB, L); no-op cast for f32

    # --- adaptive average pool: one MXU matmul on the natural layout -------
    pooled = jnp.dot(x, p_ref[...], preferred_element_type=jnp.float32)  # (TB, C*S)

    # --- channel-attention logits + softmax (tiny, VPU/EUP only) -----------
    chan = [pooled[:, c * S:(c + 1) * S] for c in range(C)]              # (TB, S)
    dots = [[None] * C for _ in range(C)]
    for i in range(C):
        for j in range(i, C):
            d = jnp.sum(chan[i] * chan[j], axis=-1, keepdims=True) * scale  # (TB,1)
            dots[i][j] = d
            dots[j][i] = d
    attn = []
    for t in range(C):
        row = dots[t]
        m = row[0]
        for c in range(1, C):
            m = jnp.maximum(m, row[c])
        e = [jnp.exp(row[c] - m) for c in range(C)]
        tot = e[0]
        for c in range(1, C):
            tot = tot + e[c]
        inv = pl.reciprocal(tot, approx=True)
        inv = inv * (2.0 - tot * inv)          # Newton step (atol 1e-5 safe)
        attn.append([e[c] * inv for c in range(C)])

    # --- channel mix in the interleaved lane layout -------------------------
    # Lane k holds pixel n = k // C, channel c = k % C.  The output at lane k
    # (target channel t = k % C) is sum_c attn[t, c] * x[k + (c - t)].  For the
    # lanes that survive the channel select below, k + (c - t) always stays
    # inside the same pixel group, so jnp.roll's wrap-around is never selected.
    xs = {0: x}
    for d in range(1, C):
        xs[d] = jnp.roll(x, -d, axis=1)        # value x[k + d] at lane k
        xs[-d] = jnp.roll(x, d, axis=1)        # value x[k - d] at lane k

    lane = lax.broadcasted_iota(jnp.int32, (1, L), 1)
    if C & (C - 1) == 0:
        ch_id = jnp.bitwise_and(lane, C - 1)
    else:
        ch_id = lane % C

    out = None
    for t in range(C):
        mixed = attn[t][0] * xs[-t]
        for c in range(1, C):
            mixed = mixed + attn[t][c] * xs[c - t]
        out = mixed if out is None else jnp.where(ch_id == t, mixed, out)

    o_ref[...] = _gelu_exact(out).astype(o_ref.dtype)


def _pick_tb(B, L, vmem_limit_bytes):
    """Batch-tile size: ~24 live block-sized arrays (I/O double buffers +
    in-kernel temporaries) must fit the VMEM budget; multiple of 8 sublanes."""
    per_batch = 24 * L * 4
    cap = max(1, int(0.6 * vmem_limit_bytes) // per_batch)
    tb = min(B, cap)
    if tb >= 8:
        tb = (tb // 8) * 8
    return max(1, tb)


def cf_module_forward(x, scale_size=SCALE_SIZE):
    """x: (B, H, W, C) float32 NHWC -> (B, H, W, C).  Fully fused, no wrapper
    transposes: only free reshapes of contiguous dims around the pallas_call."""
    B, H, W, C = x.shape
    S = scale_size[0] * scale_size[1]
    scale = float(S) ** -0.5
    L = H * W * C

    x_flat = x.reshape(B, L)                               # free view of NHWC
    p_int = _interleaved_pool_matrix(H, W, C, *scale_size)  # (L, C*S)

    # Generation-aware VMEM limit (v7x: 64 MiB physical -> 48 MiB; v5e/v6e:
    # 128 MiB -> 96 MiB).  Fallback assumes the smallest (v7x) VMEM.
    try:
        phys_vmem = pltpu.get_tpu_info().vmem_capacity_bytes
    except Exception:
        phys_vmem = 64 * 1024 * 1024
    vmem_limit = int(min(0.75 * phys_vmem, 96 * 1024 * 1024))

    TB = _pick_tb(B, L, vmem_limit)
    grid = (pl.cdiv(B, TB),)

    out = pl.pallas_call(
        functools.partial(_cf_kernel, C=C, S=S, scale=scale),
        out_shape=jax.ShapeDtypeStruct((B, L), x.dtype),
        grid_spec=pltpu.PrefetchScalarGridSpec(
            num_scalar_prefetch=0,
            grid=grid,
            in_specs=[
                pl.BlockSpec((TB, L), lambda b: (b, 0)),
                pl.BlockSpec((L, C * S), lambda b: (0, 0)),
            ],
            out_specs=pl.BlockSpec((TB, L), lambda b: (b, 0)),
        ),
        compiler_params=pltpu.CompilerParams(
            dimension_semantics=("parallel",),
            vmem_limit_bytes=vmem_limit,
        ),
    )(x_flat, p_int)

    return out.reshape(B, H, W, C)


def _reference(x, scale_size=SCALE_SIZE):
    """Pure-JAX reference replicating the PyTorch forward."""
    B, H, W, C = x.shape
    S = scale_size[0] * scale_size[1]
    scale = float(S) ** -0.5
    pmat = jnp.asarray(_pool_matrix_np(H, W, *scale_size))   # (S, H*W)
    p = jnp.transpose(x, (0, 3, 1, 2)).reshape(B, C, H * W)  # b c (h w)
    pooled = jnp.einsum('bcn,sn->bcs', p, pmat)              # (B, C, S)
    dots = jnp.einsum('bin,bjn->bij', pooled, pooled) * scale
    attn = jax.nn.softmax(dots, axis=-1)
    out = jnp.einsum('bhwc,btc->bhwt', x, attn)
    return 0.5 * out * (1.0 + jax.scipy.special.erf(out / math.sqrt(2.0)))


if __name__ == "__main__":
    key = jax.random.PRNGKey(0)
    x = jax.random.normal(key, (2, 16, 16, 4), dtype=jnp.float32)

    y = cf_module_forward(x)
    y = jax.block_until_ready(y)

    y_ref = _reference(x)
    np.testing.assert_allclose(np.asarray(y), np.asarray(y_ref),
                               rtol=1e-4, atol=1e-5)
    print("KERNEL_OK")
</pallas_src>

<mosaic_0001>
module attributes {stable_mosaic.version = 11 : i64} {
  func.func @_cf_kernel(%arg0: i32, %arg1: memref<2x1024xf32, #tpu.memory_space<vmem>>, %arg2: memref<1024x64xf32, #tpu.memory_space<vmem>>, %arg3: memref<2x1024xf32, #tpu.memory_space<vmem>>) attributes {dimension_semantics = [#tpu.dimension_semantics<parallel>], iteration_bounds = array<i64: 1>, scalar_prefetch = 0 : i64, scratch_operands = 0 : i64, tpu.core_type = #tpu.core_type<tc>, window_params = [{transform_indices = @transform_0, window_bounds = array<i64: 2, 1024>}, {pipeline_mode = #tpu.pipeline_mode<synchronous>, transform_indices = @transform_1, window_bounds = array<i64: 1024, 64>}, {transform_indices = @transform_2, window_bounds = array<i64: 2, 1024>}]} {
    %c0 = arith.constant 0 : index
    %c0_0 = arith.constant 0 : index
    %0 = vector.load %arg1[%c0, %c0_0] : memref<2x1024xf32, #tpu.memory_space<vmem>>, vector<2x1024xf32>
    %c0_1 = arith.constant 0 : index
    %c0_2 = arith.constant 0 : index
    %1 = vector.load %arg2[%c0_1, %c0_2] : memref<1024x64xf32, #tpu.memory_space<vmem>>, vector<1024x64xf32>
    %cst = arith.constant dense<0.000000e+00> : vector<2x64xf32>
    %2 = tpu.matmul %0, %1, %cst {dimension_numbers = #tpu.dot_dimension_numbers<[1], [0], [0], [1], [0, 0, 1, 1], [], []>} : vector<2x1024xf32>, vector<1024x64xf32>, vector<2x64xf32> -> vector<2x64xf32>
    %3 = vector.extract_strided_slice %2 {offsets = [0, 0], sizes = [2, 16], strides = [1, 1]} : vector<2x64xf32> to vector<2x16xf32>
    %4 = vector.extract_strided_slice %2 {offsets = [0, 16], sizes = [2, 16], strides = [1, 1]} : vector<2x64xf32> to vector<2x16xf32>
    %5 = vector.extract_strided_slice %2 {offsets = [0, 32], sizes = [2, 16], strides = [1, 1]} : vector<2x64xf32> to vector<2x16xf32>
    %6 = vector.extract_strided_slice %2 {offsets = [0, 48], sizes = [2, 16], strides = [1, 1]} : vector<2x64xf32> to vector<2x16xf32>
    %7 = arith.mulf %3, %3 : vector<2x16xf32>
    %cst_3 = arith.constant dense<0.000000e+00> : vector<2xf32>
    %8 = vector.multi_reduction <add>, %7, %cst_3 [1] : vector<2x16xf32> to vector<2xf32>
    %9 = vector.shape_cast %8 : vector<2xf32> to vector<2x1xf32>
    %cst_4 = arith.constant 2.500000e-01 : f32
    %10 = vector.broadcast %cst_4 : f32 to vector<2x1xf32>
    %11 = arith.mulf %9, %10 : vector<2x1xf32>
    %12 = arith.mulf %3, %4 : vector<2x16xf32>
    %cst_5 = arith.constant dense<0.000000e+00> : vector<2xf32>
    %13 = vector.multi_reduction <add>, %12, %cst_5 [1] : vector<2x16xf32> to vector<2xf32>
    %14 = vector.shape_cast %13 : vector<2xf32> to vector<2x1xf32>
    %cst_6 = arith.constant 2.500000e-01 : f32
    %15 = vector.broadcast %cst_6 : f32 to vector<2x1xf32>
    %16 = arith.mulf %14, %15 : vector<2x1xf32>
    %17 = arith.mulf %3, %5 : vector<2x16xf32>
    %cst_7 = arith.constant dense<0.000000e+00> : vector<2xf32>
    %18 = vector.multi_reduction <add>, %17, %cst_7 [1] : vector<2x16xf32> to vector<2xf32>
    %19 = vector.shape_cast %18 : vector<2xf32> to vector<2x1xf32>
    %cst_8 = arith.constant 2.500000e-01 : f32
    %20 = vector.broadcast %cst_8 : f32 to vector<2x1xf32>
    %21 = arith.mulf %19, %20 : vector<2x1xf32>
    %22 = arith.mulf %3, %6 : vector<2x16xf32>
    %cst_9 = arith.constant dense<0.000000e+00> : vector<2xf32>
    %23 = vector.multi_reduction <add>, %22, %cst_9 [1] : vector<2x16xf32> to vector<2xf32>
    %24 = vector.shape_cast %23 : vector<2xf32> to vector<2x1xf32>
    %cst_10 = arith.constant 2.500000e-01 : f32
    %25 = vector.broadcast %cst_10 : f32 to vector<2x1xf32>
    %26 = arith.mulf %24, %25 : vector<2x1xf32>
    %27 = arith.mulf %4, %4 : vector<2x16xf32>
    %cst_11 = arith.constant dense<0.000000e+00> : vector<2xf32>
    %28 = vector.multi_reduction <add>, %27, %cst_11 [1] : vector<2x16xf32> to vector<2xf32>
    %29 = vector.shape_cast %28 : vector<2xf32> to vector<2x1xf32>
    %cst_12 = arith.constant 2.500000e-01 : f32
    %30 = vector.broadcast %cst_12 : f32 to vector<2x1xf32>
    %31 = arith.mulf %29, %30 : vector<2x1xf32>
    %32 = arith.mulf %4, %5 : vector<2x16xf32>
    %cst_13 = arith.constant dense<0.000000e+00> : vector<2xf32>
    %33 = vector.multi_reduction <add>, %32, %cst_13 [1] : vector<2x16xf32> to vector<2xf32>
    %34 = vector.shape_cast %33 : vector<2xf32> to vector<2x1xf32>
    %cst_14 = arith.constant 2.500000e-01 : f32
    %35 = vector.broadcast %cst_14 : f32 to vector<2x1xf32>
    %36 = arith.mulf %34, %35 : vector<2x1xf32>
    %37 = arith.mulf %4, %6 : vector<2x16xf32>
    %cst_15 = arith.constant dense<0.000000e+00> : vector<2xf32>
    %38 = vector.multi_reduction <add>, %37, %cst_15 [1] : vector<2x16xf32> to vector<2xf32>
    %39 = vector.shape_cast %38 : vector<2xf32> to vector<2x1xf32>
    %cst_16 = arith.constant 2.500000e-01 : f32
    %40 = vector.broadcast %cst_16 : f32 to vector<2x1xf32>
    %41 = arith.mulf %39, %40 : vector<2x1xf32>
    %42 = arith.mulf %5, %5 : vector<2x16xf32>
    %cst_17 = arith.constant dense<0.000000e+00> : vector<2xf32>
    %43 = vector.multi_reduction <add>, %42, %cst_17 [1] : vector<2x16xf32> to vector<2xf32>
    %44 = vector.shape_cast %43 : vector<2xf32> to vector<2x1xf32>
    %cst_18 = arith.constant 2.500000e-01 : f32
    %45 = vector.broadcast %cst_18 : f32 to vector<2x1xf32>
    %46 = arith.mulf %44, %45 : vector<2x1xf32>
    %47 = arith.mulf %5, %6 : vector<2x16xf32>
    %cst_19 = arith.constant dense<0.000000e+00> : vector<2xf32>
    %48 = vector.multi_reduction <add>, %47, %cst_19 [1] : vector<2x16xf32> to vector<2xf32>
    %49 = vector.shape_cast %48 : vector<2xf32> to vector<2x1xf32>
    %cst_20 = arith.constant 2.500000e-01 : f32
    %50 = vector.broadcast %cst_20 : f32 to vector<2x1xf32>
    %51 = arith.mulf %49, %50 : vector<2x1xf32>
    %52 = arith.mulf %6, %6 : vector<2x16xf32>
    %cst_21 = arith.constant dense<0.000000e+00> : vector<2xf32>
    %53 = vector.multi_reduction <add>, %52, %cst_21 [1] : vector<2x16xf32> to vector<2xf32>
    %54 = vector.shape_cast %53 : vector<2xf32> to vector<2x1xf32>
    %cst_22 = arith.constant 2.500000e-01 : f32
    %55 = vector.broadcast %cst_22 : f32 to vector<2x1xf32>
    %56 = arith.mulf %54, %55 : vector<2x1xf32>
    %57 = arith.maximumf %11, %16 : vector<2x1xf32>
    %58 = arith.maximumf %57, %21 : vector<2x1xf32>
    %59 = arith.maximumf %58, %26 : vector<2x1xf32>
    %60 = arith.subf %11, %59 : vector<2x1xf32>
    %61 = math.exp %60 : vector<2x1xf32>
    %62 = arith.subf %16, %59 : vector<2x1xf32>
    %63 = math.exp %62 : vector<2x1xf32>
    %64 = arith.subf %21, %59 : vector<2x1xf32>
    %65 = math.exp %64 : vector<2x1xf32>
    %66 = arith.subf %26, %59 : vector<2x1xf32>
    %67 = math.exp %66 : vector<2x1xf32>
    %68 = arith.addf %61, %63 : vector<2x1xf32>
    %69 = arith.addf %68, %65 : vector<2x1xf32>
    %70 = arith.addf %69, %67 : vector<2x1xf32>
    %71 = tpu.reciprocal %70 {approx = true} : vector<2x1xf32> -> vector<2x1xf32>
    %72 = arith.mulf %70, %71 : vector<2x1xf32>
    %cst_23 = arith.constant 2.000000e+00 : f32
    %73 = vector.broadcast %cst_23 : f32 to vector<2x1xf32>
    %74 = arith.subf %73, %72 : vector<2x1xf32>
    %75 = arith.mulf %71, %74 : vector<2x1xf32>
    %76 = arith.mulf %61, %75 : vector<2x1xf32>
    %77 = arith.mulf %63, %75 : vector<2x1xf32>
    %78 = arith.mulf %65, %75 : vector<2x1xf32>
    %79 = arith.mulf %67, %75 : vector<2x1xf32>
    %80 = arith.maximumf %16, %31 : vector<2x1xf32>
    %81 = arith.maximumf %80, %36 : vector<2x1xf32>
    %82 = arith.maximumf %81, %41 : vector<2x1xf32>
    %83 = arith.subf %16, %82 : vector<2x1xf32>
    %84 = math.exp %83 : vector<2x1xf32>
    %85 = arith.subf %31, %82 : vector<2x1xf32>
    %86 = math.exp %85 : vector<2x1xf32>
    %87 = arith.subf %36, %82 : vector<2x1xf32>
    %88 = math.exp %87 : vector<2x1xf32>
    %89 = arith.subf %41, %82 : vector<2x1xf32>
    %90 = math.exp %89 : vector<2x1xf32>
    %91 = arith.addf %84, %86 : vector<2x1xf32>
    %92 = arith.addf %91, %88 : vector<2x1xf32>
    %93 = arith.addf %92, %90 : vector<2x1xf32>
    %94 = tpu.reciprocal %93 {approx = true} : vector<2x1xf32> -> vector<2x1xf32>
    %95 = arith.mulf %93, %94 : vector<2x1xf32>
    %cst_24 = arith.constant 2.000000e+00 : f32
    %96 = vector.broadcast %cst_24 : f32 to vector<2x1xf32>
    %97 = arith.subf %96, %95 : vector<2x1xf32>
    %98 = arith.mulf %94, %97 : vector<2x1xf32>
    %99 = arith.mulf %84, %98 : vector<2x1xf32>
    %100 = arith.mulf %86, %98 : vector<2x1xf32>
    %101 = arith.mulf %88, %98 : vector<2x1xf32>
    %102 = arith.mulf %90, %98 : vector<2x1xf32>
    %103 = arith.maximumf %21, %36 : vector<2x1xf32>
    %104 = arith.maximumf %103, %46 : vector<2x1xf32>
    %105 = arith.maximumf %104, %51 : vector<2x1xf32>
    %106 = arith.subf %21, %105 : vector<2x1xf32>
    %107 = math.exp %106 : vector<2x1xf32>
    %108 = arith.subf %36, %105 : vector<2x1xf32>
    %109 = math.exp %108 : vector<2x1xf32>
    %110 = arith.subf %46, %105 : vector<2x1xf32>
    %111 = math.exp %110 : vector<2x1xf32>
    %112 = arith.subf %51, %105 : vector<2x1xf32>
    %113 = math.exp %112 : vector<2x1xf32>
    %114 = arith.addf %107, %109 : vector<2x1xf32>
    %115 = arith.addf %114, %111 : vector<2x1xf32>
    %116 = arith.addf %115, %113 : vector<2x1xf32>
    %117 = tpu.reciprocal %116 {approx = true} : vector<2x1xf32> -> vector<2x1xf32>
    %118 = arith.mulf %116, %117 : vector<2x1xf32>
    %cst_25 = arith.constant 2.000000e+00 : f32
    %119 = vector.broadcast %cst_25 : f32 to vector<2x1xf32>
    %120 = arith.subf %119, %118 : vector<2x1xf32>
    %121 = arith.mulf %117, %120 : vector<2x1xf32>
    %122 = arith.mulf %107, %121 : vector<2x1xf32>
    %123 = arith.mulf %109, %121 : vector<2x1xf32>
    %124 = arith.mulf %111, %121 : vector<2x1xf32>
    %125 = arith.mulf %113, %121 : vector<2x1xf32>
    %126 = arith.maximumf %26, %41 : vector<2x1xf32>
    %127 = arith.maximumf %126, %51 : vector<2x1xf32>
    %128 = arith.maximumf %127, %56 : vector<2x1xf32>
    %129 = arith.subf %26, %128 : vector<2x1xf32>
    %130 = math.exp %129 : vector<2x1xf32>
    %131 = arith.subf %41, %128 : vector<2x1xf32>
    %132 = math.exp %131 : vector<2x1xf32>
    %133 = arith.subf %51, %128 : vector<2x1xf32>
    %134 = math.exp %133 : vector<2x1xf32>
    %135 = arith.subf %56, %128 : vector<2x1xf32>
    %136 = math.exp %135 : vector<2x1xf32>
    %137 = arith.addf %130, %132 : vector<2x1xf32>
    %138 = arith.addf %137, %134 : vector<2x1xf32>
    %139 = arith.addf %138, %136 : vector<2x1xf32>
    %140 = tpu.reciprocal %139 {approx = true} : vector<2x1xf32> -> vector<2x1xf32>
    %141 = arith.mulf %139, %140 : vector<2x1xf32>
    %cst_26 = arith.constant 2.000000e+00 : f32
    %142 = vector.broadcast %cst_26 : f32 to vector<2x1xf32>
    %143 = arith.subf %142, %141 : vector<2x1xf32>
    %144 = arith.mulf %140, %143 : vector<2x1xf32>
    %145 = arith.mulf %130, %144 : vector<2x1xf32>
    %146 = arith.mulf %132, %144 : vector<2x1xf32>
    %147 = arith.mulf %134, %144 : vector<2x1xf32>
    %148 = arith.mulf %136, %144 : vector<2x1xf32>
    %149 = vector.extract_strided_slice %0 {offsets = [0, 1], sizes = [2, 1023], strides = [1, 1]} : vector<2x1024xf32> to vector<2x1023xf32>
    %150 = vector.extract_strided_slice %0 {offsets = [0, 0], sizes = [2, 1], strides = [1, 1]} : vector<2x1024xf32> to vector<2x1xf32>
    %151 = tpu.concatenate %149, %150 in 1 : vector<2x1023xf32>, vector<2x1xf32> -> vector<2x1024xf32>
    %152 = vector.extract_strided_slice %0 {offsets = [0, 1023], sizes = [2, 1], strides = [1, 1]} : vector<2x1024xf32> to vector<2x1xf32>
    %153 = vector.extract_strided_slice %0 {offsets = [0, 0], sizes = [2, 1023], strides = [1, 1]} : vector<2x1024xf32> to vector<2x1023xf32>
    %154 = tpu.concatenate %152, %153 in 1 : vector<2x1xf32>, vector<2x1023xf32> -> vector<2x1024xf32>
    %155 = vector.extract_strided_slice %0 {offsets = [0, 2], sizes = [2, 1022], strides = [1, 1]} : vector<2x1024xf32> to vector<2x1022xf32>
    %156 = vector.extract_strided_slice %0 {offsets = [0, 0], sizes = [2, 2], strides = [1, 1]} : vector<2x1024xf32> to vector<2x2xf32>
    %157 = tpu.concatenate %155, %156 in 1 : vector<2x1022xf32>, vector<2x2xf32> -> vector<2x1024xf32>
    %158 = vector.extract_strided_slice %0 {offsets = [0, 1022], sizes = [2, 2], strides = [1, 1]} : vector<2x1024xf32> to vector<2x2xf32>
    %159 = vector.extract_strided_slice %0 {offsets = [0, 0], sizes = [2, 1022], strides = [1, 1]} : vector<2x1024xf32> to vector<2x1022xf32>
    %160 = tpu.concatenate %158, %159 in 1 : vector<2x2xf32>, vector<2x1022xf32> -> vector<2x1024xf32>
    %161 = vector.extract_strided_slice %0 {offsets = [0, 3], sizes = [2, 1021], strides = [1, 1]} : vector<2x1024xf32> to vector<2x1021xf32>
    %162 = vector.extract_strided_slice %0 {offsets = [0, 0], sizes = [2, 3], strides = [1, 1]} : vector<2x1024xf32> to vector<2x3xf32>
    %163 = tpu.concatenate %161, %162 in 1 : vector<2x1021xf32>, vector<2x3xf32> -> vector<2x1024xf32>
    %164 = vector.extract_strided_slice %0 {offsets = [0, 1021], sizes = [2, 3], strides = [1, 1]} : vector<2x1024xf32> to vector<2x3xf32>
    %165 = vector.extract_strided_slice %0 {offsets = [0, 0], sizes = [2, 1021], strides = [1, 1]} : vector<2x1024xf32> to vector<2x1021xf32>
    %166 = tpu.concatenate %164, %165 in 1 : vector<2x3xf32>, vector<2x1021xf32> -> vector<2x1024xf32>
    %167 = tpu.iota {dimensions = array<i32: 1>} : vector<1x1024xi32>
    %c3_i32 = arith.constant 3 : i32
    %168 = vector.broadcast %c3_i32 : i32 to vector<1x1024xi32>
    %169 = arith.andi %167, %168 : vector<1x1024xi32>
    %170 = vector.broadcast %76 : vector<2x1xf32> to vector<2x1024xf32>
    %171 = arith.mulf %170, %0 : vector<2x1024xf32>
    %172 = vector.broadcast %77 : vector<2x1xf32> to vector<2x1024xf32>
    %173 = arith.mulf %172, %151 : vector<2x1024xf32>
    %174 = arith.addf %171, %173 : vector<2x1024xf32>
    %175 = vector.broadcast %78 : vector<2x1xf32> to vector<2x1024xf32>
    %176 = arith.mulf %175, %157 : vector<2x1024xf32>
    %177 = arith.addf %174, %176 : vector<2x1024xf32>
    %178 = vector.broadcast %79 : vector<2x1xf32> to vector<2x1024xf32>
    %179 = arith.mulf %178, %163 : vector<2x1024xf32>
    %180 = arith.addf %177, %179 : vector<2x1024xf32>
    %181 = vector.broadcast %99 : vector<2x1xf32> to vector<2x1024xf32>
    %182 = arith.mulf %181, %154 : vector<2x1024xf32>
    %183 = vector.broadcast %100 : vector<2x1xf32> to vector<2x1024xf32>
    %184 = arith.mulf %183, %0 : vector<2x1024xf32>
    %185 = arith.addf %182, %184 : vector<2x1024xf32>
    %186 = vector.broadcast %101 : vector<2x1xf32> to vector<2x1024xf32>
    %187 = arith.mulf %186, %151 : vector<2x1024xf32>
    %188 = arith.addf %185, %187 : vector<2x1024xf32>
    %189 = vector.broadcast %102 : vector<2x1xf32> to vector<2x1024xf32>
    %190 = arith.mulf %189, %157 : vector<2x1024xf32>
    %191 = arith.addf %188, %190 : vector<2x1024xf32>
    %c1_i32 = arith.constant 1 : i32
    %192 = vector.broadcast %c1_i32 : i32 to vector<1x1024xi32>
    %193 = arith.cmpi eq, %169, %192 : vector<1x1024xi32>
    %194 = vector.shape_cast %193 : vector<1x1024xi1> to vector<1x1024xi1>
    %195 = vector.broadcast %194 : vector<1x1024xi1> to vector<2x1024xi1>
    %196 = arith.select %195, %191, %180 : vector<2x1024xi1>, vector<2x1024xf32>
    %197 = vector.broadcast %122 : vector<2x1xf32> to vector<2x1024xf32>
    %198 = arith.mulf %197, %160 : vector<2x1024xf32>
    %199 = vector.broadcast %123 : vector<2x1xf32> to vector<2x1024xf32>
    %200 = arith.mulf %199, %154 : vector<2x1024xf32>
    %201 = arith.addf %198, %200 : vector<2x1024xf32>
    %202 = vector.broadcast %124 : vector<2x1xf32> to vector<2x1024xf32>
    %203 = arith.mulf %202, %0 : vector<2x1024xf32>
    %204 = arith.addf %201, %203 : vector<2x1024xf32>
    %205 = vector.broadcast %125 : vector<2x1xf32> to vector<2x1024xf32>
    %206 = arith.mulf %205, %151 : vector<2x1024xf32>
    %207 = arith.addf %204, %206 : vector<2x1024xf32>
    %c2_i32 = arith.constant 2 : i32
    %208 = vector.broadcast %c2_i32 : i32 to vector<1x1024xi32>
    %209 = arith.cmpi eq, %169, %208 : vector<1x1024xi32>
    %210 = vector.shape_cast %209 : vector<1x1024xi1> to vector<1x1024xi1>
    %211 = vector.broadcast %210 : vector<1x1024xi1> to vector<2x1024xi1>
    %212 = arith.select %211, %207, %196 : vector<2x1024xi1>, vector<2x1024xf32>
    %213 = vector.broadcast %145 : vector<2x1xf32> to vector<2x1024xf32>
    %214 = arith.mulf %213, %166 : vector<2x1024xf32>
    %215 = vector.broadcast %146 : vector<2x1xf32> to vector<2x1024xf32>
    %216 = arith.mulf %215, %160 : vector<2x1024xf32>
    %217 = arith.addf %214, %216 : vector<2x1024xf32>
    %218 = vector.broadcast %147 : vector<2x1xf32> to vector<2x1024xf32>
    %219 = arith.mulf %218, %154 : vector<2x1024xf32>
    %220 = arith.addf %217, %219 : vector<2x1024xf32>
    %221 = vector.broadcast %148 : vector<2x1xf32> to vector<2x1024xf32>
    %222 = arith.mulf %221, %0 : vector<2x1024xf32>
    %223 = arith.addf %220, %222 : vector<2x1024xf32>
    %c3_i32_27 = arith.constant 3 : i32
    %224 = vector.broadcast %c3_i32_27 : i32 to vector<1x1024xi32>
    %225 = arith.cmpi eq, %169, %224 : vector<1x1024xi32>
    %226 = vector.shape_cast %225 : vector<1x1024xi1> to vector<1x1024xi1>
    %227 = vector.broadcast %226 : vector<1x1024xi1> to vector<2x1024xi1>
    %228 = arith.select %227, %223, %212 : vector<2x1024xi1>, vector<2x1024xf32>
    %cst_28 = arith.constant 0.707106769 : f32
    %229 = vector.broadcast %cst_28 : f32 to vector<2x1024xf32>
    %230 = arith.mulf %228, %229 : vector<2x1024xf32>
    %231 = math.absf %230 : vector<2x1024xf32>
    %cst_29 = arith.constant 0.327591091 : f32
    %232 = vector.broadcast %cst_29 : f32 to vector<2x1024xf32>
    %233 = arith.mulf %232, %231 : vector<2x1024xf32>
    %cst_30 = arith.constant 1.000000e+00 : f32
    %234 = vector.broadcast %cst_30 : f32 to vector<2x1024xf32>
    %235 = arith.addf %234, %233 : vector<2x1024xf32>
    %236 = tpu.reciprocal %235 {approx = true} : vector<2x1024xf32> -> vector<2x1024xf32>
    %237 = arith.mulf %235, %236 : vector<2x1024xf32>
    %cst_31 = arith.constant 2.000000e+00 : f32
    %238 = vector.broadcast %cst_31 : f32 to vector<2x1024xf32>
    %239 = arith.subf %238, %237 : vector<2x1024xf32>
    %240 = arith.mulf %236, %239 : vector<2x1024xf32>
    %cst_32 = arith.constant 1.06140542 : f32
    %241 = vector.broadcast %cst_32 : f32 to vector<2x1024xf32>
    %242 = arith.mulf %240, %241 : vector<2x1024xf32>
    %cst_33 = arith.constant -1.45315206 : f32
    %243 = vector.broadcast %cst_33 : f32 to vector<2x1024xf32>
    %244 = arith.addf %243, %242 : vector<2x1024xf32>
    %245 = arith.mulf %240, %244 : vector<2x1024xf32>
    %cst_34 = arith.constant 1.42141378 : f32
    %246 = vector.broadcast %cst_34 : f32 to vector<2x1024xf32>
    %247 = arith.addf %246, %245 : vector<2x1024xf32>
    %248 = arith.mulf %240, %247 : vector<2x1024xf32>
    %cst_35 = arith.constant -0.284496725 : f32
    %249 = vector.broadcast %cst_35 : f32 to vector<2x1024xf32>
    %250 = arith.addf %249, %248 : vector<2x1024xf32>
    %251 = arith.mulf %240, %250 : vector<2x1024xf32>
    %cst_36 = arith.constant 0.254829586 : f32
    %252 = vector.broadcast %cst_36 : f32 to vector<2x1024xf32>
    %253 = arith.addf %252, %251 : vector<2x1024xf32>
    %254 = arith.mulf %240, %253 : vector<2x1024xf32>
    %cst_37 = arith.constant 0.000000e+00 : f32
    %255 = vector.broadcast %cst_37 : f32 to vector<2x1024xf32>
    %256 = arith.subf %255, %231 : vector<2x1024xf32>
    %257 = arith.mulf %256, %231 : vector<2x1024xf32>
    %258 = math.exp %257 : vector<2x1024xf32>
    %259 = arith.mulf %254, %258 : vector<2x1024xf32>
    %cst_38 = arith.constant 0.000000e+00 : f32
    %260 = vector.broadcast %cst_38 : f32 to vector<2x1024xf32>
    %261 = arith.cmpf oge, %228, %260 : vector<2x1024xf32>
    %cst_39 = arith.constant 2.000000e+00 : f32
    %262 = vector.broadcast %cst_39 : f32 to vector<2x1024xf32>
    %263 = arith.subf %262, %259 : vector<2x1024xf32>
    %264 = arith.select %261, %263, %259 : vector<2x1024xi1>, vector<2x1024xf32>
    %cst_40 = arith.constant 5.000000e-01 : f32
    %265 = vector.broadcast %cst_40 : f32 to vector<2x1024xf32>
    %266 = arith.mulf %265, %228 : vector<2x1024xf32>
    %267 = arith.mulf %266, %264 : vector<2x1024xf32>
    %c0_41 = arith.constant 0 : index
    %c0_42 = arith.constant 0 : index
    %268 = vector.load %arg3[%c0_41, %c0_42] : memref<2x1024xf32, #tpu.memory_space<vmem>>, vector<2x1024xf32>
    tpu.vector_store %arg3[%c0_41, %c0_42], %267 {strides = array<i32>} : memref<2x1024xf32, #tpu.memory_space<vmem>>, vector<2x1024xf32>,
    return
  }
  func.func @transform_0(%arg0: i32) -> (i32, i32) {
    %c0_i32 = arith.constant 0 : i32
    %c0_i32_0 = arith.constant 0 : i32
    return %arg0, %c0_i32 : i32, i32
  }
  func.func @transform_1(%arg0: i32) -> (i32, i32) {
    %c0_i32 = arith.constant 0 : i32
    %c0_i32_0 = arith.constant 0 : i32
    %c0_i32_1 = arith.constant 0 : i32
    return %c0_i32, %c0_i32_0 : i32, i32
  }
  func.func @transform_2(%arg0: i32) -> (i32, i32) {
    %c0_i32 = arith.constant 0 : i32
    %c0_i32_0 = arith.constant 0 : i32
    return %arg0, %c0_i32 : i32, i32
  }
}

</mosaic_0001>

<bundles_post_ra>
// kernel: tpu_custom_call.1
= control target key start
LH: loop header
LB: loop body
LE: loop exit
PB: predicated region body
PF: predicated region fallthrough
CT: control target
= control target key end

     0   :  { %v1840_v47 = vmov 1983009808   ;;  %v3202_v49 = vlaneseq  ;;  %s3199_s0 = inlined_call_operand.vmem [shape: f32[2,1024], index: 0, kind: input, shape index: {}]   ;;  %s3200_s1 = inlined_call_operand.vmem [shape: f32[1024,64], index: 1, kind: input, shape index: {}]   ;;  %s3201_s2 = inlined_call_operand.hbm [shape: f32[2,1024], index: 2, kind: output, shape index: {}]  }
   0x1   :  { %v30_v0 = vld [vmem:[%s3200_s1 + $0x80] sm:$0xff]  ;;  %v31_v1 = vld [vmem:[%s3200_s1 + $0x88] sm:$0xff]  ;;  %v32_v11 = vld [vmem:[%s3200_s1 + $0x90] sm:$0xff]  ;;  %v146_v48 = vunpack.c.l.s4 %v1840_v47 }
   0x2   :  { %v62_v2 = vld [vmem:[%s3200_s1 + $0x180] sm:$0xff]  ;;  %v1603_v3 = vpack.c.bf16 %v31_v1, %v30_v0  ;;  %v63_v4 = vld [vmem:[%s3200_s1 + $0x188] sm:$0xff]  ;;  %v33_v13 = vld [vmem:[%s3200_s1 + $0x98] sm:$0xff]  ;;  %v149_v0 = vshrl.u32 %v3202_v49, 7 }
   0x3   :  { %v14_v5 = vld [vmem:[%s3200_s1] sm:$0xff]  ;;  %v15_v6 = vld [vmem:[%s3200_s1 + $0x8] sm:$0xff]  ;;  %v1635_v7 = vpack.c.bf16 %v63_v4, %v62_v2  ;;  %v64_v14 = vld [vmem:[%s3200_s1 + $0x190] sm:$0xff]  ;;  %v1607_v16 = vpack.c.bf16 %v33_v13, %v32_v11  ;;  %v147_v63 = vunpack.c.0.s8 %v146_v48 }
   0x4   :  { %v1605_v8 = vpack.c.bf16 %v15_v6, %v14_v5  ;;  %v46_v9 = vld [vmem:[%s3200_s1 + $0x100] sm:$0xff]  ;;  %v47_v10 = vld [vmem:[%s3200_s1 + $0x108] sm:$0xff]  ;;  %1604 = vmatprep.subr.bf16.mxu0 %v1603_v3  ;;  %v65_v15 = vld [vmem:[%s3200_s1 + $0x198] sm:$0xff] }
   0x5   :  { %v1637_v12 = vpack.c.bf16 %v47_v10, %v46_v9  ;;  %1636 = vmatprep.subr.bf16.mxu1 %v1635_v7  ;;  %v1639_v17 = vpack.c.bf16 %v65_v15, %v64_v14  ;;  %v16_v18 = vld [vmem:[%s3200_s1 + $0x10] sm:$0xff]  ;;  %v17_v19 = vld [vmem:[%s3200_s1 + $0x18] sm:$0xff]  ;;  %v34_v23 = vld [vmem:[%s3200_s1 + $0xa0] sm:$0xff]  ;;  %v2017_v13 = vsub.s32 %v147_v63, %v149_v0 }
   0x6   :  { %1606 = vmatpush3.bf16.msra.mxu0 %v1605_v8  ;;  %v48_v20 = vld [vmem:[%s3200_s1 + $0x110] sm:$0xff]  ;;  %v1609_v21 = vpack.c.bf16 %v17_v19, %v16_v18  ;;  %v49_v22 = vld [vmem:[%s3200_s1 + $0x118] sm:$0xff]  ;;  %v35_v24 = vld [vmem:[%s3200_s1 + $0xa8] sm:$0xff] }
   0x7   :  { %1638 = vmatpush3.bf16.msra.mxu1 %v1637_v12  ;;  %1608 = vmatprep.subr.bf16.mxu0 %v1607_v16  ;;  %v1641_v25 = vpack.c.bf16 %v49_v22, %v48_v20  ;;  %v1611_v26 = vpack.c.bf16 %v35_v24, %v34_v23  ;;  %v66_v27 = vld [vmem:[%s3200_s1 + $0x1a0] sm:$0xff]  ;;  %v67_v28 = vld [vmem:[%s3200_s1 + $0x1a8] sm:$0xff]  ;;  %v36_v35 = vld [vmem:[%s3200_s1 + $0xb0] sm:$0xff]  ;;  %3256 = vst [vmem:[#allocation5_spill] sm:$0xff] %v2017_v13 }
   0x8   :  { %1640 = vmatprep.subr.bf16.mxu1 %v1639_v17  ;;  %v18_v29 = vld [vmem:[%s3200_s1 + $0x20] sm:$0xff]  ;;  %v1643_v30 = vpack.c.bf16 %v67_v28, %v66_v27  ;;  %v19_v31 = vld [vmem:[%s3200_s1 + $0x28] sm:$0xff]  ;;  %v37_v36 = vld [vmem:[%s3200_s1 + $0xb8] sm:$0xff] }
   0x9   :  { %v50_v32 = vld [vmem:[%s3200_s1 + $0x120] sm:$0xff]  ;;  %v51_v33 = vld [vmem:[%s3200_s1 + $0x128] sm:$0xff]  ;;  %v1613_v34 = vpack.c.bf16 %v19_v31, %v18_v29  ;;  %v68_v37 = vld [vmem:[%s3200_s1 + $0x1b0] sm:$0xff]  ;;  %v1615_v39 = vpack.c.bf16 %v37_v36, %v36_v35 }
   0xa   :  { %1610 = vmatpush3.bf16.msra.mxu0 %v1609_v21  ;;  %v1645_v38 = vpack.c.bf16 %v51_v33, %v50_v32  ;;  %v69_v40 = vld [vmem:[%s3200_s1 + $0x1b8] sm:$0xff]  ;;  %v20_v41 = vld [vmem:[%s3200_s1 + $0x30] sm:$0xff]  ;;  %v38_v46 = vld [vmem:[%s3200_s1 + $0xc0] sm:$0xff] }
   0xb   :  { %1642 = vmatpush3.bf16.msra.mxu1 %v1641_v25  ;;  %1612 = vmatprep.subr.bf16.mxu0 %v1611_v26  ;;  %v21_v42 = vld [vmem:[%s3200_s1 + $0x38] sm:$0xff]  ;;  %v1647_v43 = vpack.c.bf16 %v69_v40, %v68_v37  ;;  %v52_v44 = vld [vmem:[%s3200_s1 + $0x130] sm:$0xff]  ;;  %v39_v50 = vld [vmem:[%s3200_s1 + $0xc8] sm:$0xff] }
   0xc   :  { %1644 = vmatprep.subr.bf16.mxu1 %v1643_v30  ;;  %v53_v45 = vld [vmem:[%s3200_s1 + $0x138] sm:$0xff]  ;;  %v70_v51 = vld [vmem:[%s3200_s1 + $0x1c0] sm:$0xff]  ;;  %v71_v52 = vld [vmem:[%s3200_s1 + $0x1c8] sm:$0xff]  ;;  %v1617_v53 = vpack.c.bf16 %v21_v42, %v20_v41  ;;  %v1619_v55 = vpack.c.bf16 %v39_v50, %v38_v46 }
   0xd   :  { %v1649_v54 = vpack.c.bf16 %v53_v45, %v52_v44  ;;  %v22_v56 = vld [vmem:[%s3200_s1 + $0x40] sm:$0xff]  ;;  %v23_v57 = vld [vmem:[%s3200_s1 + $0x48] sm:$0xff]  ;;  %v1651_v59 = vpack.c.bf16 %v71_v52, %v70_v51  ;;  %v40_v61 = vld [vmem:[%s3200_s1 + $0xd0] sm:$0xff] }
   0xe   :  { %1614 = vmatpush3.bf16.msra.mxu0 %v1613_v34  ;;  %v54_v58 = vld [vmem:[%s3200_s1 + $0x140] sm:$0xff]  ;;  %v55_v60 = vld [vmem:[%s3200_s1 + $0x148] sm:$0xff]  ;;  %v41_v62 = vld [vmem:[%s3200_s1 + $0xd8] sm:$0xff]  ;;  %v1621_v3 = vpack.c.bf16 %v23_v57, %v22_v56 }
   0xf   :  { %1646 = vmatpush3.bf16.msra.mxu1 %v1645_v38  ;;  %1616 = vmatprep.subr.bf16.mxu0 %v1615_v39  ;;  %v72_v1 = vld [vmem:[%s3200_s1 + $0x1d0] sm:$0xff]  ;;  %v73_v2 = vld [vmem:[%s3200_s1 + $0x1d8] sm:$0xff]  ;;  %v1653_v4 = vpack.c.bf16 %v55_v60, %v54_v58  ;;  %v1623_v5 = vpack.c.bf16 %v41_v62, %v40_v61  ;;  %v42_v11 = vld [vmem:[%s3200_s1 + $0xe0] sm:$0xff] }
  0x10   :  { %1648 = vmatprep.subr.bf16.mxu1 %v1647_v43  ;;  %v24_v6 = vld [vmem:[%s3200_s1 + $0x50] sm:$0xff]  ;;  %v25_v7 = vld [vmem:[%s3200_s1 + $0x58] sm:$0xff]  ;;  %v1655_v9 = vpack.c.bf16 %v73_v2, %v72_v1  ;;  %v43_v12 = vld [vmem:[%s3200_s1 + $0xe8] sm:$0xff] }
  0x11   :  { %v56_v8 = vld [vmem:[%s3200_s1 + $0x150] sm:$0xff]  ;;  %v57_v10 = vld [vmem:[%s3200_s1 + $0x158] sm:$0xff]  ;;  %v74_v14 = vld [vmem:[%s3200_s1 + $0x1e0] sm:$0xff]  ;;  %v1625_v16 = vpack.c.bf16 %v25_v7, %v24_v6  ;;  %v1627_v19 = vpack.c.bf16 %v43_v12, %v42_v11 }
  0x12   :  { %1618 = vmatpush3.bf16.msra.mxu0 %v1617_v53  ;;  %v75_v15 = vld [vmem:[%s3200_s1 + $0x1e8] sm:$0xff]  ;;  %v26_v17 = vld [vmem:[%s3200_s1 + $0x60] sm:$0xff]  ;;  %v1657_v18 = vpack.c.bf16 %v57_v10, %v56_v8  ;;  %v44_v25 = vld [vmem:[%s3200_s1 + $0xf0] sm:$0xff] }
  0x13   :  { %1650 = vmatpush3.bf16.msra.mxu1 %v1649_v54  ;;  %1620 = vmatprep.subr.bf16.mxu0 %v1619_v55  ;;  %v27_v20 = vld [vmem:[%s3200_s1 + $0x68] sm:$0xff]  ;;  %v58_v21 = vld [vmem:[%s3200_s1 + $0x160] sm:$0xff]  ;;  %v1659_v23 = vpack.c.bf16 %v75_v15, %v74_v14  ;;  %v45_v26 = vld [vmem:[%s3200_s1 + $0xf8] sm:$0xff] }
  0x14   :  { %1652 = vmatprep.subr.bf16.mxu1 %v1651_v59  ;;  %v12_v22 = vld [vmem:[%s3199_s0] sm:$0xff]  ;;  %v59_v24 = vld [vmem:[%s3200_s1 + $0x168] sm:$0xff]  ;;  %v76_v29 = vld [vmem:[%s3200_s1 + $0x1f0] sm:$0xff]  ;;  %v1629_v31 = vpack.c.bf16 %v27_v20, %v26_v17  ;;  %v1631_v35 = vpack.c.bf16 %v45_v26, %v44_v25 }
  0x15   :  { %v2047_v27 = vrot.slane %v12_v22, %v2017_v13  ;;  %v144_v28 = vcombine.high %v12_v22, %v12_v22  ;;  %v77_v30 = vld [vmem:[%s3200_s1 + $0x1f8] sm:$0xff]  ;;  %v1661_v34 = vpack.c.bf16 %v59_v24, %v58_v21  ;;  %v28_v36 = vld [vmem:[%s3200_s1 + $0x70] sm:$0xff]  ;;  %v94_v42 = vld [vmem:[%s3200_s1 + $0x280] sm:$0xff] }
  0x16   :  { %1622 = vmatpush3.bf16.msra.mxu0 %v1621_v3  ;;  %v29_v37 = vld [vmem:[%s3200_s1 + $0x78] sm:$0xff]  ;;  %v60_v38 = vld [vmem:[%s3200_s1 + $0x170] sm:$0xff]  ;;  %v1663_v39 = vpack.c.bf16 %v77_v30, %v76_v29  ;;  %v95_v43 = vld [vmem:[%s3200_s1 + $0x288] sm:$0xff] }
  0x17   :  { %1654 = vmatpush3.bf16.msra.mxu1 %v1653_v4  ;;  %1624 = vmatprep.subr.bf16.mxu0 %v1623_v5  ;;  %v2057_v32 = vcombine.high %v2047_v27, %v2047_v27  ;;  %v2060_v33 = vrot.slane %v144_v28, %v2017_v13  ;;  %v61_v40 = vld [vmem:[%s3200_s1 + $0x178] sm:$0xff]  ;;  %v126_v44 = vld [vmem:[%s3200_s1 + $0x380] sm:$0xff]  ;;  %v127_v45 = vld [vmem:[%s3200_s1 + $0x388] sm:$0xff]  ;;  %v1633_v46 = vpack.c.bf16 %v29_v37, %v28_v36 }
  0x18   :  { %1656 = vmatprep.subr.bf16.mxu1 %v1655_v9  ;;  %v1665_v47 = vpack.c.bf16 %v61_v40, %v60_v38  ;;  %v1667_v48 = vpack.c.bf16 %v95_v43, %v94_v42  ;;  %v78_v50 = vld [vmem:[%s3200_s1 + $0x200] sm:$0xff]  ;;  %v79_v51 = vld [vmem:[%s3200_s1 + $0x208] sm:$0xff]  ;;  %v1699_v53 = vpack.c.bf16 %v127_v45, %v126_v44  ;;  %v96_v55 = vld [vmem:[%s3200_s1 + $0x290] sm:$0xff] }
  0x19   :  { %3257 = vst [vmem:[#allocation6_spill] sm:$0xff] %v2060_v33  ;;  %250 = vmatprep.mubr.f32.mxu0 %v2057_v32  ;;  %v2077_v41 = vcombine.high %v2060_v33, %v2060_v33  ;;  %v110_v52 = vld [vmem:[%s3200_s1 + $0x300] sm:$0xff]  ;;  %v111_v54 = vld [vmem:[%s3200_s1 + $0x308] sm:$0xff]  ;;  %v97_v56 = vld [vmem:[%s3200_s1 + $0x298] sm:$0xff]  ;;  %v1669_v59 = vpack.c.bf16 %v79_v51, %v78_v50 }
  0x1a   :  { %1626 = vmatpush3.bf16.msra.mxu0 %v1625_v16  ;;  %v128_v57 = vld [vmem:[%s3200_s1 + $0x390] sm:$0xff]  ;;  %v129_v58 = vld [vmem:[%s3200_s1 + $0x398] sm:$0xff]  ;;  %v1701_v60 = vpack.c.bf16 %v111_v54, %v110_v52  ;;  %v1671_v61 = vpack.c.bf16 %v97_v56, %v96_v55  ;;  %v98_v3 = vld [vmem:[%s3200_s1 + $0x2a0] sm:$0xff] }
  0x1b   :  { %1658 = vmatpush3.bf16.msra.mxu1 %v1657_v18  ;;  %1628 = vmatprep.subr.bf16.mxu0 %v1627_v19  ;;  %3258 = vst [vmem:[#allocation7_spill] sm:$0xff] %v2077_v41  ;;  %v80_v62 = vld [vmem:[%s3200_s1 + $0x210] sm:$0xff]  ;;  %v81_v63 = vld [vmem:[%s3200_s1 + $0x218] sm:$0xff]  ;;  %v1703_v1 = vpack.c.bf16 %v129_v58, %v128_v57  ;;  %v99_v4 = vld [vmem:[%s3200_s1 + $0x2a8] sm:$0xff] }
  0x1c   :  { %1660 = vmatprep.subr.bf16.mxu1 %v1659_v23  ;;  %320 = vmatprep.mubr.f32.mxu1 %v2077_v41  ;;  %v112_v0 = vld [vmem:[%s3200_s1 + $0x310] sm:$0xff]  ;;  %v113_v2 = vld [vmem:[%s3200_s1 + $0x318] sm:$0xff]  ;;  %v130_v5 = vld [vmem:[%s3200_s1 + $0x3a0] sm:$0xff]  ;;  %v1673_v7 = vpack.c.bf16 %v81_v63, %v80_v62  ;;  %v1675_v9 = vpack.c.bf16 %v99_v4, %v98_v3 }
  0x1d   :  { %v131_v6 = vld [vmem:[%s3200_s1 + $0x3a8] sm:$0xff]  ;;  %v1705_v8 = vpack.c.bf16 %v113_v2, %v112_v0  ;;  %v82_v10 = vld [vmem:[%s3200_s1 + $0x220] sm:$0xff]  ;;  %v100_v16 = vld [vmem:[%s3200_s1 + $0x2b0] sm:$0xff] }
  0x1e   :  { %1630 = vmatpush3.bf16.msra.mxu0 %v1629_v31  ;;  %v83_v11 = vld [vmem:[%s3200_s1 + $0x228] sm:$0xff]  ;;  %v114_v12 = vld [vmem:[%s3200_s1 + $0x320] sm:$0xff]  ;;  %v1707_v14 = vpack.c.bf16 %v131_v6, %v130_v5  ;;  %v101_v17 = vld [vmem:[%s3200_s1 + $0x2b8] sm:$0xff] }
  0x1f   :  { %1662 = vmatpush3.bf16.msra.mxu1 %v1661_v34  ;;  %1632 = vmatprep.subr.bf16.mxu0 %v1631_v35  ;;  %v115_v15 = vld [vmem:[%s3200_s1 + $0x328] sm:$0xff]  ;;  %v132_v18 = vld [vmem:[%s3200_s1 + $0x3b0] sm:$0xff]  ;;  %v133_v19 = vld [vmem:[%s3200_s1 + $0x3b8] sm:$0xff]  ;;  %v1677_v20 = vpack.c.bf16 %v83_v11, %v82_v10  ;;  %v1679_v23 = vpack.c.bf16 %v101_v17, %v100_v16 }
  0x20   :  { %1664 = vmatprep.subr.bf16.mxu1 %v1663_v39  ;;  %v84_v21 = vld [vmem:[%s3200_s1 + $0x230] sm:$0xff]  ;;  %v1709_v22 = vpack.c.bf16 %v115_v15, %v114_v12  ;;  %v85_v24 = vld [vmem:[%s3200_s1 + $0x238] sm:$0xff]  ;;  %v1711_v28 = vpack.c.bf16 %v133_v19, %v132_v18  ;;  %v102_v29 = vld [vmem:[%s3200_s1 + $0x2c0] sm:$0xff] }
  0x21   :  { %v116_v25 = vld [vmem:[%s3200_s1 + $0x330] sm:$0xff]  ;;  %v117_v26 = vld [vmem:[%s3200_s1 + $0x338] sm:$0xff]  ;;  %v103_v30 = vld [vmem:[%s3200_s1 + $0x2c8] sm:$0xff] }
  0x22   :  { %1634 = vmatpush3.bf16.msra.mxu0 %v1633_v46  ;;  %v134_v31 = vld [vmem:[%s3200_s1 + $0x3c0] sm:$0xff]  ;;  %v135_v34 = vld [vmem:[%s3200_s1 + $0x3c8] sm:$0xff] }
  0x23   :  { %1666 = vmatpush3.bf16.msra.mxu1 %v1665_v47  ;;  %1668 = vmatprep.subr.bf16.mxu0 %v1667_v48  ;;  %v13_v35 = vld [vmem:[%s3199_s0 + $0x8] sm:$0xff] }
  0x24   :  { %1700 = vmatprep.subr.bf16.mxu1 %v1699_v53 }
  0x25   :  { %251 = vmatmul.mubr.f32.vlgmr.msra.gmra.mrb[0].mxu0 %v2047_v27 }
  0x26   :  { %321 = vmatmul.mubr.f32.vlgmr.msra.gmra.mrb[0].mxu1 %v2060_v33  ;;  %1670 = vmatpush3.bf16.msra.mxu0 %v1669_v59 }
  0x27   :  { %1702 = vmatpush3.bf16.msra.mxu1 %v1701_v60  ;;  %1672 = vmatprep.subr.bf16.mxu0 %v1671_v61 }
  0x28   :  { %1704 = vmatprep.subr.bf16.mxu1 %v1703_v1 }
  0x2a   :  { %1674 = vmatpush3.bf16.msra.mxu0 %v1673_v7 }
  0x2b   :  { %1706 = vmatpush3.bf16.msra.mxu1 %v1705_v8  ;;  %1676 = vmatprep.subr.bf16.mxu0 %v1675_v9 }
  0x2c   :  { %1708 = vmatprep.subr.bf16.mxu1 %v1707_v14 }
  0x2d   :  { %7 = vsyncpa [#allocation3], 0  ;;  %v1681_v36 = vpack.c.bf16 %v85_v24, %v84_v21  ;;  %v2194_v37 = vrot.slane %v13_v35, %v2017_v13  ;;  %v161_v38 = vcombine.high %v13_v35, %v13_v35  ;;  %v1713_v39 = vpack.c.bf16 %v117_v26, %v116_v25  ;;  %v86_v42 = vld [vmem:[%s3200_s1 + $0x240] sm:$0xff]  ;;  %v87_v43 = vld [vmem:[%s3200_s1 + $0x248] sm:$0xff]  ;;  %s1842_s15 = smov 112   ;;  %s1843_s16 = smov 127  }
  0x2e   :  { %1678 = vmatpush3.bf16.msra.mxu0 %v1677_v20  ;;  %v1683_v40 = vpack.c.bf16 %v103_v30, %v102_v29  ;;  %v118_v44 = vld [vmem:[%s3200_s1 + $0x340] sm:$0xff]  ;;  %v1715_v45 = vpack.c.bf16 %v135_v34, %v134_v31  ;;  %v119_v46 = vld [vmem:[%s3200_s1 + $0x348] sm:$0xff]  ;;  %v104_v47 = vld [vmem:[%s3200_s1 + $0x2d0] sm:$0xff]  ;;  %v1685_v54 = vpack.c.bf16 %v87_v43, %v86_v42  ;;  %s1844_s17 = smov 1   ;;  %s1845_s18 = smov 80   ;;  %vm467_vm0 = vcmask 123904  }
  0x2f   :  { %3259 = vst [vmem:[#allocation8_spill] sm:$0xff] %v2194_v37  ;;  %1710 = vmatpush3.bf16.msra.mxu1 %v1709_v22  ;;  %1680 = vmatprep.subr.bf16.mxu0 %v1679_v23  ;;  %v105_v48 = vld [vmem:[%s3200_s1 + $0x2d8] sm:$0xff]  ;;  %v2216_v50 = vcombine.high %v2194_v37, %v2194_v37  ;;  %v2219_v51 = vrot.slane %v161_v38, %v2017_v13  ;;  %v136_v52 = vld [vmem:[%s3200_s1 + $0x3d0] sm:$0xff]  ;;  %v106_v63 = vld [vmem:[%s3200_s1 + $0x2e0] sm:$0xff]  ;;  %vm662_vm1 = vcmask 1039360   ;;  %s1846_s19 = smov 126  }
  0x30   :  { %1712 = vmatprep.subr.bf16.mxu1 %v1711_v28  ;;  %v137_v53 = vld [vmem:[%s3200_s1 + $0x3d8] sm:$0xff]  ;;  %v1717_v56 = vpack.c.bf16 %v119_v46, %v118_v44  ;;  %v1687_v57 = vpack.c.bf16 %v105_v48, %v104_v47  ;;  %v88_v58 = vld [vmem:[%s3200_s1 + $0x250] sm:$0xff]  ;;  %v107_v0 = vld [vmem:[%s3200_s1 + $0x2e8] sm:$0xff]  ;;  %vm697_vm2 = vcmask 7168   ;;  %s1847_s20 = smov 2   ;;  %vm730_vm3 = vcmask 1031168  }
  0x31   :  { %3260 = vst [vmem:[#allocation9_spill] sm:$0xff] %v2216_v50  ;;  %390 = vmatprep.mubr.f32.mxu0 %v2216_v50  ;;  %v2230_v55 = vcombine.high %v2219_v51, %v2219_v51  ;;  %v89_v59 = vld [vmem:[%s3200_s1 + $0x258] sm:$0xff]  ;;  %v120_v60 = vld [vmem:[%s3200_s1 + $0x350] sm:$0xff]  ;;  %v1719_v61 = vpack.c.bf16 %v137_v53, %v136_v52  ;;  %v138_v1 = vld [vmem:[%s3200_s1 + $0x3e0] sm:$0xff]  ;;  %v1691_v5 = vpack.c.bf16 %v107_v0, %v106_v63  ;;  %s1848_s0 = smov 3   ;;  %vm765_vm4 = vcmask 15360  }
  0x32   :  { %1682 = vmatpush3.bf16.msra.mxu0 %v1681_v36  ;;  %v121_v62 = vld [vmem:[%s3200_s1 + $0x358] sm:$0xff]  ;;  %v139_v2 = vld [vmem:[%s3200_s1 + $0x3e8] sm:$0xff]  ;;  %v1689_v3 = vpack.c.bf16 %v89_v59, %v88_v58  ;;  %v90_v6 = vld [vmem:[%s3200_s1 + $0x260] sm:$0xff]  ;;  %s1849_s21 = smov 125   ;;  %vm798_vm5 = vcmask 1022976   ;;  %vm833_vm6 = vcmask 23552  }
  0x33   :  { %1714 = vmatpush3.bf16.msra.mxu1 %v1713_v39  ;;  %1684 = vmatprep.subr.bf16.mxu0 %v1683_v40  ;;  %v1721_v4 = vpack.c.bf16 %v121_v62, %v120_v60  ;;  %v91_v7 = vld [vmem:[%s3200_s1 + $0x268] sm:$0xff]  ;;  %v122_v8 = vld [vmem:[%s3200_s1 + $0x360] sm:$0xff]  ;;  %v1723_v9 = vpack.c.bf16 %v139_v2, %v138_v1  ;;  %v108_v11 = vld [vmem:[%s3200_s1 + $0x2f0] sm:$0xff]  ;;  %s1850_s22 = smov [#allocation2]  }
  0x34   :  { %1716 = vmatprep.subr.bf16.mxu1 %v1715_v45  ;;  %460 = vmatprep.mubr.f32.mxu1 %v2230_v55  ;;  %v123_v10 = vld [vmem:[%s3200_s1 + $0x368] sm:$0xff]  ;;  %v109_v12 = vld [vmem:[%s3200_s1 + $0x2f8] sm:$0xff]  ;;  %v140_v14 = vld [vmem:[%s3200_s1 + $0x3f0] sm:$0xff]  ;;  %v1693_v16 = vpack.c.bf16 %v91_v7, %v90_v6  ;;  %s1455_s23 = sshll.u32 %s1850_s22, 4  ;;  %s1456_s23 = int_to_ptr.vmem [resolvable:$true] %s1455_s23 }
  0x35   :  { %v141_v15 = vld [vmem:[%s3200_s1 + $0x3f8] sm:$0xff]  ;;  %v1725_v17 = vpack.c.bf16 %v123_v10, %v122_v8  ;;  %v1695_v18 = vpack.c.bf16 %v109_v12, %v108_v11  ;;  %v92_v19 = vld [vmem:[%s3200_s1 + $0x270] sm:$0xff]  ;;  %s1816_s24 = scalar_lea.vmem %s1456_s23, 256  ;;  %p1821_p1 = scmp.lt.s32.totalorder %s1456_s23, %s1456_s23 }
  0x36   :  { %1686 = vmatpush3.bf16.msra.mxu0 %v1685_v54  ;;  %v93_v20 = vld [vmem:[%s3200_s1 + $0x278] sm:$0xff]  ;;  %v1727_v21 = vpack.c.bf16 %v141_v15, %v140_v14  ;;  %v124_v22 = vld [vmem:[%s3200_s1 + $0x370] sm:$0xff]  ;;  %p1817_p0 = scmp.ne.s32.totalorder %s1456_s23, %s1816_s24  ;;  %p1822_p2 = scmp.lt.s32.totalorder %s1816_s24, %s1816_s24 }
  0x37   :  { %1718 = vmatpush3.bf16.msra.mxu1 %v1717_v56  ;;  %1688 = vmatprep.subr.bf16.mxu0 %v1687_v57  ;;  %v125_v23 = vld [vmem:[%s3200_s1 + $0x378] sm:$0xff]  ;;  %v1697_v24 = vpack.c.bf16 %v93_v20, %v92_v19  ;;  %s1841_s1 = smov 96  }
  0x38   :  { %1720 = vmatprep.subr.bf16.mxu1 %v1719_v61  ;;  %v1729_v25 = vpack.c.bf16 %v125_v23, %v124_v22  ;;  %p1823_p3 = por %p1822_p2, %p1821_p1 }
  0x3a   :  { %1690 = vmatpush3.bf16.msra.mxu0 %v1689_v3  ;;  %p1824_p4 = pnand %p1823_p3, %p1817_p0 }
  0x3b   :  { %1722 = vmatpush3.bf16.msra.mxu1 %v1721_v4  ;;  %1692 = vmatprep.subr.bf16.mxu0 %v1691_v5 }
  0x3c   :  { %1724 = vmatprep.subr.bf16.mxu1 %v1723_v9 }
  0x3e   :  { %1694 = vmatpush3.bf16.msra.mxu0 %v1693_v16 }
  0x3f   :  { %1726 = vmatpush3.bf16.msra.mxu1 %v1725_v17  ;;  %1696 = vmatprep.subr.bf16.mxu0 %v1695_v18 }
  0x40   :  { %1728 = vmatprep.subr.bf16.mxu1 %v1727_v21 }
  0x42   :  { %1698 = vmatpush3.bf16.msra.mxu0 %v1697_v24 }
  0x43   :  { %1730 = vmatpush3.bf16.msra.mxu1 %v1729_v25 }
  0x45   :  { %391 = vmatmul.mubr.f32.vlgmr.msra.gmra.mrb[2].mxu0 %v2194_v37 }
  0x46   :  { %461 = vmatmul.mubr.f32.vlgmr.msra.gmra.mrb[2].mxu1 %v2219_v51 }
  0xf8   :  { %v1495_v26 = vpop.f32.mrb[0].mxu0 }
  0xf9   :  { %v1530_v28 = vpop.f32.mrb[0].mxu1  ;;  %v1496_v29 = vpop.f32.mrb[1].mxu0 }
  0xfa   :  { %v1497_v30 = vadd.f32 %v1496_v29, %v1495_v26  ;;  %v1531_v31 = vpop.f32.mrb[1].mxu1 }
  0xfb   :  { %v1532_v34 = vadd.f32 %v1531_v31, %v1530_v28 }
  0xfd   :  { %v323_v35 = vadd.f32 %v1532_v34, %v1497_v30 }
 0x118   :  { %v1565_v36 = vpop.f32.mrb[2].mxu0 }
 0x119   :  { %v1566_v38 = vpop.f32.mrb[3].mxu0  ;;  %v1600_v39 = vpop.f32.mrb[2].mxu1 }
 0x11a   :  { %v1567_v40 = vadd.f32 %v1566_v38, %v1565_v36  ;;  %v1601_v42 = vpop.f32.mrb[3].mxu1 }
 0x11b   :  { %v1602_v43 = vadd.f32 %v1601_v42, %v1600_v39 }
 0x11c   :  { %v393_v44 = vadd.f32 %v1567_v40, %v323_v35 }
 0x11e   :  { %v2295_v45 = vadd.f32 %v1602_v43, %v393_v44 }
 0x120   :  { %481 = vrot.lane.b32.xlu1 %v2295_v45, %s1841_s1  ;;  %473 = vrot.lane.b32.xlu0 %v2295_v45, %s1842_s15  ;;  %v466_v46 = vmul.f32 %v2295_v45, %v2295_v45 }
 0x122   :  { %v468_v47 = vsel %vm467_vm0, %v466_v46, 0.0 }
 0x124   :  { %646 = vrot.lane.b32.xlu1 %v2047_v27, %s1843_s16  ;;  %648 = vrot.lane.b32.xlu0 %v2057_v32, %s1843_s16 }
 0x128   :  { %650 = vrot.lane.b32.xlu1 %v2060_v33, %s1843_s16  ;;  %656 = vrot.lane.b32.xlu0 %v2216_v50, %s1843_s16 }
 0x12c   :  { %652 = vrot.lane.b32.xlu1 %v2077_v41, %s1843_s16  ;;  %660 = vrot.lane.b32.xlu0 %v2230_v55, %s1843_s16 }
 0x130   :  { %654 = vrot.lane.b32.xlu1 %v2194_v37, %s1843_s16  ;;  %683 = vrot.lane.b32.xlu0 %v2047_v27, %s1844_s17 }
 0x134   :  { %658 = vrot.lane.b32.xlu1 %v2219_v51, %s1843_s16  ;;  %687 = vrot.lane.b32.xlu0 %v2060_v33, %s1844_s17 }
 0x138   :  { %680 = vrot.lane.b32.xlu1 %v2230_v55, %s1844_s17  ;;  %691 = vrot.lane.b32.xlu0 %v2194_v37, %s1844_s17 }
 0x13c   :  { %685 = vrot.lane.b32.xlu1 %v2057_v32, %s1844_s17  ;;  %695 = vrot.lane.b32.xlu0 %v2219_v51, %s1844_s17 }
 0x140   :  { %689 = vrot.lane.b32.xlu1 %v2077_v41, %s1844_s17  ;;  %489 = vrot.lane.b32.xlu0 %v2295_v45, %s1845_s18 }
 0x144   :  { %693 = vrot.lane.b32.xlu1 %v2216_v50, %s1844_s17 }
 0x148   :  { %498 = vrot.lane.b32.xlu1 %v466_v46, %s1842_s15 }
 0x14c   :  { %521 = vrot.lane.b32.xlu1 %v466_v46, %s1841_s1 }
 0x150   :  { %535 = vrot.lane.b32.xlu1 %v466_v46, %s1845_s18 }
 0x15f   :  { %469 = vadd.xlane.f32.xlu0 %v468_v47 }
 0x192   :  { %v482_v48 = vpop.permute.xlu1 %481  ;;  %v474_v52 = vpop.permute.xlu0 %473 }
 0x193   :  { %v2324_v53 = vmul.f32 %v482_v48, %v2295_v45  ;;  %v2327_v54 = vmul.f32 %v474_v52, %v2295_v45 }
 0x195   :  { %514 = vrot.lane.b32.xlu1 %v2324_v53, %s1842_s15  ;;  %506 = vrot.lane.b32.xlu0 %v2327_v54, %s1842_s15  ;;  %v477_v38 = vsel %vm467_vm0, %v2327_v54, 0.0  ;;  %v485_v39 = vsel %vm467_vm0, %v2324_v53, 0.0 }
 0x196   :  { %v647_v56 = vpop.permute.xlu1 %646  ;;  %v649_v57 = vpop.permute.xlu0 %648 }
 0x197   :  { %v2334_v58 = vsel %vm662_vm1, %v647_v56, %v649_v57 }
 0x199   :  { %528 = vrot.lane.b32.xlu1 %v2327_v54, %s1841_s1  ;;  %716 = vrot.lane.b32.xlu0 %v2057_v32, %s1846_s19 }
 0x19a   :  { %v651_v59 = vpop.permute.xlu1 %650  ;;  %v657_v60 = vpop.permute.xlu0 %656 }
 0x19b   :  { %v2340_v61 = vsel %vm662_vm1, %v649_v57, %v651_v59 }
 0x19d   :  { %714 = vrot.lane.b32.xlu1 %v2047_v27, %s1846_s19  ;;  %720 = vrot.lane.b32.xlu0 %v2077_v41, %s1846_s19 }
 0x19e   :  { %v653_v62 = vpop.permute.xlu1 %652  ;;  %v661_v63 = vpop.permute.xlu0 %660 }
 0x19f   :  { %v2345_v0 = vsel %vm662_vm1, %v651_v59, %v653_v62  ;;  %v2348_v1 = vsel %vm662_vm1, %v661_v63, %v647_v56 }
 0x1a0   :  { %3261 = vst [vmem:[#allocation10_spill] sm:$0xff] %v2345_v0  ;;  %3262 = vst [vmem:[#allocation11_spill] sm:$0xff] %v2348_v1 }
 0x1a1   :  { %718 = vrot.lane.b32.xlu1 %v2060_v33, %s1846_s19  ;;  %724 = vrot.lane.b32.xlu0 %v2216_v50, %s1846_s19 }
 0x1a2   :  { %v655_v2 = vpop.permute.xlu1 %654  ;;  %v684_v3 = vpop.permute.xlu0 %683 }
 0x1a3   :  { %v2353_v4 = vsel %vm662_vm1, %v653_v62, %v655_v2  ;;  %v2356_v5 = vsel %vm662_vm1, %v655_v2, %v657_v60 }
 0x1a4   :  { %3263 = vst [vmem:[#allocation12_spill] sm:$0xff] %v2353_v4  ;;  %3264 = vst [vmem:[#allocation13_spill] sm:$0xff] %v2356_v5 }
 0x1a5   :  { %722 = vrot.lane.b32.xlu1 %v2194_v37, %s1846_s19  ;;  %728 = vrot.lane.b32.xlu0 %v2230_v55, %s1846_s19 }
 0x1a6   :  { %v659_v6 = vpop.permute.xlu1 %658  ;;  %v688_v7 = vpop.permute.xlu0 %687 }
 0x1a7   :  { %v2361_v8 = vsel %vm662_vm1, %v657_v60, %v659_v6  ;;  %v2364_v9 = vsel %vm662_vm1, %v659_v6, %v661_v63 }
 0x1a8   :  { %3265 = vst [vmem:[#allocation14_spill] sm:$0xff] %v2361_v8  ;;  %3266 = vst [vmem:[#allocation15_spill] sm:$0xff] %v2364_v9 }
 0x1a9   :  { %726 = vrot.lane.b32.xlu1 %v2219_v51, %s1846_s19  ;;  %751 = vrot.lane.b32.xlu0 %v2047_v27, %s1847_s20 }
 0x1aa   :  { %v681_v10 = vpop.permute.xlu1 %680  ;;  %v692_v11 = vpop.permute.xlu0 %691 }
 0x1ab   :  { %v2370_v12 = vsel %vm697_vm2, %v681_v10, %v684_v3 }
 0x1ac   :  { %3267 = vst [vmem:[#allocation16_spill] sm:$0xff] %v2370_v12 }
 0x1ad   :  { %748 = vrot.lane.b32.xlu1 %v2230_v55, %s1847_s20  ;;  %755 = vrot.lane.b32.xlu0 %v2060_v33, %s1847_s20 }
 0x1ae   :  { %v686_v14 = vpop.permute.xlu1 %685  ;;  %v696_v15 = vpop.permute.xlu0 %695 }
 0x1af   :  { %v2377_v16 = vsel %vm697_vm2, %v684_v3, %v686_v14  ;;  %v2380_v17 = vsel %vm697_vm2, %v686_v14, %v688_v7  ;;  %v2383_v18 = vsel %vm697_vm2, %v696_v15, %v681_v10 }
 0x1b0   :  { %3268 = vst [vmem:[#allocation17_spill] sm:$0xff] %v2377_v16  ;;  %3269 = vst [vmem:[#allocation18_spill] sm:$0xff] %v2380_v17 }
 0x1b1   :  { %3270 = vst [vmem:[#allocation19_spill] sm:$0xff] %v2383_v18  ;;  %753 = vrot.lane.b32.xlu1 %v2057_v32, %s1847_s20  ;;  %759 = vrot.lane.b32.xlu0 %v2194_v37, %s1847_s20 }
 0x1b2   :  { %v690_v19 = vpop.permute.xlu1 %689  ;;  %v490_v25 = vpop.permute.xlu0 %489 }
 0x1b3   :  { %v2390_v20 = vsel %vm697_vm2, %v688_v7, %v690_v19  ;;  %v2393_v21 = vsel %vm697_vm2, %v690_v19, %v692_v11  ;;  %v492_v26 = vmul.f32 %v490_v25, %v2295_v45 }
 0x1b4   :  { %3271 = vst [vmem:[#allocation20_spill] sm:$0xff] %v2390_v20  ;;  %3272 = vst [vmem:[#allocation21_spill] sm:$0xff] %v2393_v21 }
 0x1b5   :  { %757 = vrot.lane.b32.xlu1 %v2077_v41, %s1847_s20  ;;  %v493_v29 = vsel %vm467_vm0, %v492_v26, 0.0 }
 0x1b6   :  { %v694_v22 = vpop.permute.xlu1 %693 }
 0x1b7   :  { %v2398_v23 = vsel %vm697_vm2, %v692_v11, %v694_v22  ;;  %v2401_v24 = vsel %vm697_vm2, %v694_v22, %v696_v15 }
 0x1b8   :  { %3273 = vst [vmem:[#allocation22_spill] sm:$0xff] %v2398_v23  ;;  %3274 = vst [vmem:[#allocation23_spill] sm:$0xff] %v2401_v24 }
 0x1b9   :  { %761 = vrot.lane.b32.xlu1 %v2216_v50, %s1847_s20 }
 0x1ba   :  { %v499_v28 = vpop.permute.xlu1 %498 }
 0x1bb   :  { %v501_v31 = vsel %vm467_vm0, %v499_v28, 0.0 }
 0x1be   :  { %v522_v30 = vpop.permute.xlu1 %521 }
 0x1bf   :  { %v524_v34 = vsel %vm467_vm0, %v522_v30, 0.0 }
 0x1c2   :  { %v536_v35 = vpop.permute.xlu1 %535 }
 0x1c3   :  { %v538_v36 = vsel %vm467_vm0, %v536_v35, 0.0 }
 0x1d0   :  { %494 = vadd.xlane.f32.xlu0 %v493_v29 }
 0x1d4   :  { %502 = vadd.xlane.f32.xlu0 %v501_v31 }
 0x1d8   :  { %525 = vadd.xlane.f32.xlu0 %v524_v34 }
 0x1dc   :  { %539 = vadd.xlane.f32.xlu0 %v538_v36 }
 0x1dd   :  { %478 = vadd.xlane.f32.xlu1 %v477_v38 }
 0x1e1   :  { %486 = vadd.xlane.f32.xlu1 %v485_v39 }
 0x1ec   :  { %v470_v40 = vpop.xlane.xlu0 %469 }
 0x1ed   :  { %v471_v36 = vmul.f32 0.25, %v470_v40 }
 0x207   :  { %v515_v42 = vpop.permute.xlu1 %514  ;;  %v507_v43 = vpop.permute.xlu0 %506 }
 0x208   :  { %v517_v44 = vsel %vm467_vm0, %v515_v42, 0.0  ;;  %v509_v45 = vsel %vm467_vm0, %v507_v43, 0.0 }
 0x209   :  { %518 = vadd.xlane.f32.xlu1 %v517_v44  ;;  %510 = vadd.xlane.f32.xlu0 %v509_v45 }
 0x20b   :  { %v529_v46 = vpop.permute.xlu1 %528  ;;  %v717_v47 = vpop.permute.xlu0 %716 }
 0x20c   :  { %v531_v48 = vsel %vm467_vm0, %v529_v46, 0.0 }
 0x20d   :  { %532 = vadd.xlane.f32.xlu0 %v531_v48 }
 0x20f   :  { %v721_v52 = vpop.permute.xlu0 %720  ;;  %v715_v54 = vpop.permute.xlu1 %714 }
 0x210   :  { %v2418_v53 = vsel %vm730_vm3, %v715_v54, %v717_v47 }
 0x213   :  { %v725_v56 = vpop.permute.xlu0 %724  ;;  %v719_v57 = vpop.permute.xlu1 %718 }
 0x214   :  { %v2421_v59 = vsel %vm730_vm3, %v717_v47, %v719_v57  ;;  %v2424_v60 = vsel %vm730_vm3, %v719_v57, %v721_v52 }
 0x215   :  { %3275 = vst [vmem:[#allocation24_spill] sm:$0xff] %v2424_v60 }
 0x217   :  { %v729_v62 = vpop.permute.xlu0 %728  ;;  %v723_v63 = vpop.permute.xlu1 %722 }
 0x218   :  { %v2427_v2 = vsel %vm730_vm3, %v729_v62, %v715_v54  ;;  %v2430_v3 = vsel %vm730_vm3, %v721_v52, %v723_v63  ;;  %v2433_v6 = vsel %vm730_vm3, %v723_v63, %v725_v56 }
 0x219   :  { %3276 = vst [vmem:[#allocation25_spill] sm:$0xff] %v2427_v2  ;;  %3277 = vst [vmem:[#allocation26_spill] sm:$0xff] %v2430_v3 }
 0x21a   :  { %3278 = vst [vmem:[#allocation27_spill] sm:$0xff] %v2433_v6  ;;  %816 = vrot.lane.b32.xlu1 %v2230_v55, %s1848_s0 }
 0x21b   :  { %v727_v7 = vpop.permute.xlu1 %726  ;;  %v2436_v10 = vpop.permute.xlu0 %751 }
 0x21c   :  { %v2439_v11 = vsel %vm730_vm3, %v725_v56, %v727_v7  ;;  %v2442_v14 = vsel %vm730_vm3, %v727_v7, %v729_v62 }
 0x21d   :  { %3279 = vst [vmem:[#allocation28_spill] sm:$0xff] %v2439_v11  ;;  %3280 = vst [vmem:[#allocation29_spill] sm:$0xff] %v2442_v14 }
 0x21e   :  { %821 = vrot.lane.b32.xlu1 %v2057_v32, %s1848_s0 }
 0x21f   :  { %v2445_v15 = vpop.permute.xlu1 %748  ;;  %v2447_v19 = vpop.permute.xlu0 %755 }
 0x222   :  { %825 = vrot.lane.b32.xlu1 %v2077_v41, %s1848_s0 }
 0x223   :  { %763 = vrot.lane.b32.xlu0 %v2219_v51, %s1847_s20  ;;  %v754_v22 = vpop.permute.xlu1 %753  ;;  %v2460_v28 = vpop.permute.xlu0 %759 }
 0x224   :  { %v2454_v25 = vsel %vm765_vm4, %v2436_v10, %v754_v22  ;;  %v2458_v26 = vsel %vm765_vm4, %v754_v22, %v2447_v19 }
 0x225   :  { %3281 = vst [vmem:[#allocation30_spill] sm:$0xff] %v2454_v25  ;;  %3282 = vst [vmem:[#allocation31_spill] sm:$0xff] %v2458_v26 }
 0x226   :  { %829 = vrot.lane.b32.xlu1 %v2216_v50, %s1848_s0 }
 0x227   :  { %819 = vrot.lane.b32.xlu0 %v2047_v27, %s1848_s0  ;;  %v2464_v29 = vpop.permute.xlu1 %757 }
 0x228   :  { %v2469_v30 = vsel %vm765_vm4, %v2464_v29, %v2460_v28 }
 0x229   :  { %3283 = vst [vmem:[#allocation32_spill] sm:$0xff] %v2469_v30 }
 0x22a   :  { %782 = vrot.lane.b32.xlu1 %v2047_v27, %s1849_s21 }
 0x22b   :  { %823 = vrot.lane.b32.xlu0 %v2060_v33, %s1848_s0  ;;  %v2482_v31 = vpop.permute.xlu1 %761 }
 0x22e   :  { %786 = vrot.lane.b32.xlu1 %v2060_v33, %s1849_s21 }
 0x22f   :  { %827 = vrot.lane.b32.xlu0 %v2194_v37, %s1848_s0 }
 0x232   :  { %790 = vrot.lane.b32.xlu1 %v2194_v37, %s1849_s21 }
 0x233   :  { %831 = vrot.lane.b32.xlu0 %v2219_v51, %s1848_s0 }
 0x236   :  { %794 = vrot.lane.b32.xlu1 %v2219_v51, %s1849_s21 }
 0x237   :  { %784 = vrot.lane.b32.xlu0 %v2057_v32, %s1849_s21 }
 0x23b   :  { %788 = vrot.lane.b32.xlu0 %v2077_v41, %s1849_s21 }
 0x23f   :  { %792 = vrot.lane.b32.xlu0 %v2216_v50, %s1849_s21 }
 0x243   :  { %796 = vrot.lane.b32.xlu0 %v2230_v55, %s1849_s21 }
 0x25d   :  { %v495_v38 = vpop.xlane.xlu0 %494 }
 0x25e   :  { %v2486_v44 = vmul.f32 0.25, %v495_v38 }
 0x261   :  { %v503_v38 = vpop.xlane.xlu0 %502 }
 0x26a   :  { %v479_v34 = vpop.xlane.xlu1 %478 }
 0x26b   :  { %v480_v35 = vmul.f32 0.25, %v479_v34 }
 0x26d   :  { %v542_v42 = vmax.f32 %v471_v36, %v480_v35 }
 0x26e   :  { %v487_v39 = vpop.xlane.xlu1 %486 }
 0x26f   :  { %v2484_v43 = vmul.f32 0.25, %v487_v39 }
 0x271   :  { %v543_v45 = vmax.f32 %v542_v42, %v2484_v43 }
 0x273   :  { %v544_v46 = vmax.f32 %v543_v45, %v2486_v44  ;;  %v526_v45 = vpop.xlane.xlu0 %525 }
 0x274   :  { %v527_v13 = vmul.f32 0.25, %v526_v45 }
 0x275   :  { %v545_v47 = vsub.f32 %v471_v36, %v544_v46  ;;  %v548_v48 = vsub.f32 %v480_v35, %v544_v46  ;;  %v551_v52 = vsub.f32 %v2484_v43, %v544_v46  ;;  %v554_v54 = vsub.f32 %v2486_v44, %v544_v46 }
 0x277   :  { %v546_v56 = vmul.f32 1.442695, %v545_v47  ;;  %v549_v57 = vmul.f32 1.442695, %v548_v48  ;;  %v552_v40 = vmul.f32 1.442695, %v551_v52  ;;  %v540_v46 = vpop.xlane.xlu0 %539 }
 0x278   :  { %v555_v62 = vmul.f32 1.442695, %v554_v54  ;;  %v504_v48 = vmul.f32 0.25, %v503_v38 }
 0x279   :  { %1744 = vpow2.f32 %v546_v56 }
 0x27a   :  { %1746 = vpow2.f32 %v549_v57  ;;  %v568_v57 = vmax.f32 %v480_v35, %v504_v48 }
 0x27b   :  { %1748 = vpow2.f32 %v552_v40 }
 0x27c   :  { %1750 = vpow2.f32 %v555_v62 }
 0x283   :  { %v1745_v63 = vpop.eup %1744 }
 0x284   :  { %v1747_v7 = vpop.eup %1746 }
 0x285   :  { %v557_v22 = vadd.f32 %v1747_v7, %v1745_v63  ;;  %v1749_v34 = vpop.eup %1748 }
 0x286   :  { %v2492_v36 = vpop.eup %1750 }
 0x287   :  { %v558_v39 = vadd.f32 %v1749_v34, %v557_v22 }
 0x289   :  { %v559_v42 = vadd.f32 %v2492_v36, %v558_v39 }
 0x28b   :  { %1752 = vrcp.f32 %v559_v42 }
 0x295   :  { %v1753_v47 = vpop.eup %1752 }
 0x296   :  { %v561_v52 = vmul.f32 %v1753_v47, %v559_v42  ;;  %v519_v56 = vpop.xlane.xlu1 %518  ;;  %v511_v54 = vpop.xlane.xlu0 %510 }
 0x297   :  { %v512_v40 = vmul.f32 0.25, %v511_v54  ;;  %v520_v49 = vmul.f32 0.25, %v519_v56 }
 0x298   :  { %v562_v62 = vsub.f32 2.0, %v561_v52  ;;  %v541_v52 = vmul.f32 0.25, %v540_v46 }
 0x299   :  { %v569_v23 = vmax.f32 %v568_v57, %v512_v40  ;;  %v594_v22 = vmax.f32 %v2484_v43, %v512_v40  ;;  %v620_v38 = vmax.f32 %v2486_v44, %v520_v49 }
 0x29a   :  { %v2496_v21 = vmul.f32 %v1753_v47, %v562_v62  ;;  %v533_v20 = vpop.xlane.xlu0 %532  ;;  %v2498_v39 = vpop.permute.xlu1 %816 }
 0x29b   :  { %3284 = vst [vmem:[#allocation33_spill] sm:$0xff] %v2498_v39  ;;  %v570_v30 = vmax.f32 %v569_v23, %v520_v49  ;;  %v595_v17 = vmax.f32 %v594_v22, %v527_v13  ;;  %v534_v26 = vmul.f32 0.25, %v533_v20 }
 0x29c   :  { %v2502_v45 = vmul.f32 %v1745_v63, %v2496_v21  ;;  %v2509_v23 = vmul.f32 %v1747_v7, %v2496_v21  ;;  %v2513_v63 = vmul.f32 %v1749_v34, %v2496_v21 }
 0x29d   :  { %v571_v42 = vsub.f32 %v480_v35, %v570_v30  ;;  %v574_v25 = vsub.f32 %v504_v48, %v570_v30  ;;  %v577_v18 = vsub.f32 %v512_v40, %v570_v30  ;;  %v580_v54 = vsub.f32 %v520_v49, %v570_v30 }
 0x29e   :  { %v596_v56 = vmax.f32 %v595_v17, %v534_v26  ;;  %v621_v57 = vmax.f32 %v620_v38, %v534_v26  ;;  %v2504_v47 = vpop.permute.xlu0 %763  ;;  %v2506_v62 = vpop.permute.xlu1 %821 }
 0x29f   :  { %v572_v20 = vmul.f32 1.442695, %v571_v42  ;;  %v575_v22 = vmul.f32 1.442695, %v574_v25  ;;  %v578_v24 = vmul.f32 1.442695, %v577_v18  ;;  %v867_v18 = vmul.f32 %v2502_v45, %v2047_v27 }
 0x2a0   :  { %v581_v35 = vmul.f32 1.442695, %v580_v54  ;;  %v597_v48 = vsub.f32 %v2484_v43, %v596_v56  ;;  %v600_v30 = vsub.f32 %v512_v40, %v596_v56  ;;  %v603_v46 = vsub.f32 %v527_v13, %v596_v56 }
 0x2a1   :  { %1754 = vpow2.f32 %v572_v20  ;;  %v606_v17 = vsub.f32 %v534_v26, %v596_v56  ;;  %v622_v38 = vmax.f32 %v621_v57, %v541_v52  ;;  %v868_v56 = vmul.f32 %v2502_v45, %v2057_v32 }
 0x2a2   :  { %1756 = vpow2.f32 %v575_v22  ;;  %v598_v16 = vmul.f32 1.442695, %v597_v48  ;;  %v601_v12 = vmul.f32 1.442695, %v600_v30  ;;  %v2515_v39 = vpop.permute.xlu0 %819  ;;  %v2517_v7 = vpop.permute.xlu1 %825  ;;  %v604_v25 = vmul.f32 1.442695, %v603_v46 }
 0x2a3   :  { %1758 = vpow2.f32 %v578_v24  ;;  %v623_v13 = vsub.f32 %v2486_v44, %v622_v38  ;;  %v626_v43 = vsub.f32 %v520_v49, %v622_v38  ;;  %v607_v34 = vmul.f32 1.442695, %v606_v17 }
 0x2a4   :  { %1760 = vpow2.f32 %v581_v35  ;;  %v629_v40 = vsub.f32 %v534_v26, %v622_v38  ;;  %v632_v42 = vsub.f32 %v541_v52, %v622_v38  ;;  %v875_v24 = vmul.f32 %v2334_v58, %v2509_v23 }
 0x2a5   :  { %1762 = vpow2.f32 %v598_v16  ;;  %v624_v54 = vmul.f32 1.442695, %v623_v13  ;;  %v627_v57 = vmul.f32 1.442695, %v626_v43  ;;  %v876_v26 = vmul.f32 %v2340_v61, %v2509_v23 }
 0x2a6   :  { %1764 = vpow2.f32 %v601_v12  ;;  %v2524_v20 = vpop.permute.xlu0 %823  ;;  %v2526_v22 = vpop.permute.xlu1 %829  ;;  %v630_v49 = vmul.f32 1.442695, %v629_v40  ;;  %v633_v44 = vmul.f32 1.442695, %v632_v42  ;;  %v883_v16 = vadd.f32 %v875_v24, %v867_v18 }
 0x2a7   :  { %1766 = vpow2.f32 %v604_v25  ;;  %v891_v52 = vmul.f32 %v2418_v53, %v2513_v63  ;;  %v892_v12 = vmul.f32 %v2421_v59, %v2513_v63  ;;  %v884_v35 = vadd.f32 %v876_v26, %v868_v56 }
 0x2a8   :  { %1768 = vpow2.f32 %v607_v34  ;;  %v869_v48 = vmul.f32 %v2502_v45, %v2060_v33  ;;  %v870_v30 = vmul.f32 %v2502_v45, %v2077_v41  ;;  %v877_v18 = vmul.f32 %v2345_v0, %v2509_v23 }
 0x2a9   :  { %1770 = vpow2.f32 %v624_v54  ;;  %v899_v38 = vadd.f32 %v891_v52, %v883_v16  ;;  %v878_v25 = vmul.f32 %v2353_v4, %v2509_v23  ;;  %v900_v43 = vadd.f32 %v892_v12, %v884_v35 }
 0x2aa   :  { %1772 = vpow2.f32 %v627_v57  ;;  %v2540_v46 = vpop.permute.xlu0 %827  ;;  %v2542_v17 = vpop.permute.xlu1 %782  ;;  %v885_v40 = vadd.f32 %v877_v18, %v869_v48  ;;  %v893_v54 = vmul.f32 %v2424_v60, %v2513_v63  ;;  %v894_v24 = vmul.f32 %v2430_v3, %v2513_v63 }
 0x2ab   :  { %v2548_v13 = vpop.eup %1754  ;;  %1774 = vpow2.f32 %v630_v49  ;;  %v886_v42 = vadd.f32 %v878_v25, %v870_v30  ;;  %v871_v49 = vmul.f32 %v2502_v45, %v2194_v37  ;;  %v872_v26 = vmul.f32 %v2502_v45, %v2216_v50 }
 0x2ac   :  { %v2550_v34 = vpop.eup %1756  ;;  %1776 = vpow2.f32 %v633_v44  ;;  %v901_v12 = vadd.f32 %v893_v54, %v885_v40  ;;  %v879_v35 = vmul.f32 %v2356_v5, %v2509_v23  ;;  %v880_v48 = vmul.f32 %v2361_v8, %v2509_v23 }
 0x2ad   :  { %v2554_v56 = vpop.eup %1758  ;;  %v583_v57 = vadd.f32 %v2550_v34, %v2548_v13  ;;  %v895_v30 = vmul.f32 %v2433_v6, %v2513_v63  ;;  %v2578_v25 = vmul.f32 %v2492_v36, %v2496_v21  ;;  %v902_v60 = vadd.f32 %v894_v24, %v886_v42 }
 0x2ae   :  { %v2564_v44 = vpop.eup %1760  ;;  %v2566_v16 = vpop.permute.xlu0 %831  ;;  %v887_v54 = vadd.f32 %v879_v35, %v871_v49  ;;  %v888_v5 = vadd.f32 %v880_v48, %v872_v26  ;;  %v896_v8 = vmul.f32 %v2439_v11, %v2513_v63  ;;  %v873_v6 = vmul.f32 %v2502_v45, %v2219_v51 }
 0x2af   :  { %v787_v52 = vpop.permute.xlu1 %786  ;;  %v2574_v18 = vpop.eup %1762  ;;  %v584_v3 = vadd.f32 %v2554_v56, %v583_v57  ;;  %v874_v36 = vmul.f32 %v2502_v45, %v2230_v55  ;;  %v881_v42 = vmul.f32 %v2364_v9, %v2509_v23  ;;  %v882_v48 = vmul.f32 %v2348_v1, %v2509_v23 }
 0x2b0   :  { %v2581_v40 = vpop.eup %1764  ;;  %v903_v26 = vadd.f32 %v895_v30, %v887_v54  ;;  %v904_v35 = vadd.f32 %v896_v8, %v888_v5  ;;  %v898_v33 = vmul.f32 %v2427_v2, %v2513_v63 }
 0x2b1   :  { %v2587_v4 = vpop.eup %1766  ;;  %v585_v0 = vadd.f32 %v2564_v44, %v584_v3  ;;  %v609_v21 = vadd.f32 %v2581_v40, %v2574_v18  ;;  %v897_v3 = vmul.f32 %v2442_v14, %v2513_v63  ;;  %v889_v23 = vadd.f32 %v881_v42, %v873_v6 }
 0x2b2   :  { %v2596_v57 = vpop.eup %1768  ;;  %v785_v24 = vpop.permute.xlu0 %784  ;;  %v890_v30 = vadd.f32 %v882_v48, %v874_v36 }
 0x2b3   :  { %v791_v49 = vpop.permute.xlu1 %790  ;;  %v2602_v11 = vpop.eup %1770  ;;  %1778 = vrcp.f32 %v585_v0  ;;  %v610_v45 = vadd.f32 %v2587_v4, %v609_v21  ;;  %v799_v50 = vsel %vm798_vm5, %v2542_v17, %v785_v24  ;;  %v800_v37 = vsel %vm798_vm5, %v785_v24, %v787_v52 }
 0x2b4   :  { %v2608_v41 = vpop.eup %1772  ;;  %v907_v5 = vmul.f32 %v799_v50, %v2578_v25  ;;  %v908_v8 = vmul.f32 %v800_v37, %v2578_v25  ;;  %v905_v37 = vadd.f32 %v897_v3, %v889_v23  ;;  %v906_v2 = vadd.f32 %v898_v33, %v890_v30 }
 0x2b5   :  { %v2612_v54 = vpop.eup %1774  ;;  %v611_v14 = vadd.f32 %v2596_v57, %v610_v45  ;;  %v635_v21 = vadd.f32 %v2608_v41, %v2602_v11  ;;  %v2646_v33 = vsel %vm765_vm4, %v2447_v19, %v2464_v29 }
 0x2b6   :  { %v2619_v1 = vpop.eup %1776  ;;  %v2621_v24 = vadd.f32 %v907_v5, %v899_v38  ;;  %v2623_v9 = vadd.f32 %v908_v8, %v900_v43  ;;  %v789_v50 = vpop.permute.xlu0 %788  ;;  %v3287_v5 = vlaneseq  ;;  %3290 = vst [vmem:[#allocation38_spill] sm:$0xff] %v2646_v33 }
 0x2b7   :  { %1780 = vrcp.f32 %v611_v14  ;;  %v636_v6 = vadd.f32 %v2612_v54, %v635_v21  ;;  %v801_v36 = vsel %vm798_vm5, %v787_v52, %v789_v50  ;;  %v802_v42 = vsel %vm798_vm5, %v789_v50, %v791_v49  ;;  %v795_v63 = vpop.permute.xlu1 %794 }
 0x2b8   :  { %3285 = vst [vmem:[#allocation34_spill] sm:$0xff] %v2621_v24  ;;  %3286 = vst [vmem:[#allocation35_spill] sm:$0xff] %v2623_v9  ;;  %v909_v48 = vmul.f32 %v801_v36, %v2578_v25  ;;  %v910_v45 = vmul.f32 %v802_v42, %v2578_v25  ;;  %v851_v43 = vand.u32 127, %v3287_v5  ;;  %v2641_v50 = vsel %vm765_vm4, %v2445_v15, %v2436_v10 }
 0x2b9   :  { %v637_v38 = vadd.f32 %v2619_v1, %v636_v6 }
 0x2ba   :  { %v2632_v8 = vadd.f32 %v909_v48, %v901_v12  ;;  %v2634_v3 = vadd.f32 %v910_v45, %v902_v60  ;;  %v793_v23 = vpop.permute.xlu0 %792  ;;  %v852_v6 = vadd.s32 128, %v851_v43  ;;  %v853_v36 = vadd.s32 256, %v851_v43 }
 0x2bb   :  { %1782 = vrcp.f32 %v637_v38  ;;  %v803_v52 = vsel %vm798_vm5, %v791_v49, %v793_v23  ;;  %v804_v21 = vsel %vm798_vm5, %v793_v23, %v795_v63  ;;  %v2653_v49 = vsel %vm765_vm4, %v2460_v28, %v2482_v31 }
 0x2bc   :  { %3288 = vst [vmem:[#allocation36_spill] sm:$0xff] %v2632_v8  ;;  %3289 = vst [vmem:[#allocation37_spill] sm:$0xff] %v2634_v3  ;;  %v911_v12 = vmul.f32 %v803_v52, %v2578_v25  ;;  %v912_v60 = vmul.f32 %v804_v21, %v2578_v25  ;;  %v854_v42 = vadd.s32 384, %v851_v43  ;;  %v855_v48 = vadd.s32 512, %v851_v43 }
 0x2bd   :  { %v1779_v30 = vpop.eup %1778  ;;  %3291 = vst [vmem:[#allocation39_spill] sm:$0xff] %v2653_v49  ;;  %v856_v29 = vadd.s32 640, %v851_v43  ;;  %v857_v23 = vadd.s32 768, %v851_v43  ;;  %v858_v28 = vadd.s32 896, %v851_v43 }
 0x2be   :  { %v587_v10 = vmul.f32 %v1779_v30, %v585_v0  ;;  %v2655_v45 = vadd.f32 %v911_v12, %v903_v26  ;;  %v2657_v5 = vadd.f32 %v912_v60, %v904_v35  ;;  %v797_v19 = vpop.permute.xlu0 %796  ;;  %v2664_v26 = vand.u32 3, %v851_v43 }
 0x2bf   :  { %v805_v52 = vsel %vm798_vm5, %v795_v63, %v797_v19  ;;  %v815_v21 = vsel %vm798_vm5, %v797_v19, %v2542_v17  ;;  %v2666_v35 = vand.u32 3, %v852_v6  ;;  %v2668_v12 = vand.u32 3, %v853_v36  ;;  %v3303_v36 = vld [vmem:[#allocation16_spill] sm:$0xff] }
 0x2c0   :  { %3292 = vst [vmem:[#allocation40_spill] sm:$0xff] %v2655_v45  ;;  %3293 = vst [vmem:[#allocation41_spill] sm:$0xff] %v2657_v5  ;;  %v588_v3 = vsub.f32 2.0, %v587_v10  ;;  %v913_v8 = vmul.f32 %v805_v52, %v2578_v25  ;;  %v914_v9 = vmul.f32 %v815_v21, %v2578_v25  ;;  %v2674_v17 = vand.u32 3, %v854_v42  ;;  %v3305_v21 = vld [vmem:[#allocation17_spill] sm:$0xff] }
 0x2c1   :  { %v1781_v0 = vpop.eup %1780  ;;  %v2676_v10 = vand.u32 3, %v855_v48  ;;  %v2678_v19 = vand.u32 3, %v856_v29  ;;  %v2680_v25 = vand.u32 3, %v857_v23  ;;  %vm979_vm7 = vcmp.eq.s32.totalorder %v2664_v26, 1 }
 0x2c2   :  { %v589_v60 = vmul.f32 %v1779_v30, %v588_v3  ;;  %v613_v5 = vmul.f32 %v1781_v0, %v611_v14  ;;  %v2670_v63 = vadd.f32 %v913_v8, %v905_v37  ;;  %v2672_v45 = vadd.f32 %v914_v9, %v906_v2  ;;  %v3302_v3 = vld [vmem:[#allocation33_spill] sm:$0xff] }
 0x2c3   :  { %3296 = vst [vmem:[#allocation44_spill] sm:$0xff] %v2676_v10  ;;  %3297 = vst [vmem:[#allocation45_spill] sm:$0xff] %v2678_v19  ;;  %v2691_v37 = vand.u32 3, %v858_v28  ;;  %v2696_v8 = vsel %vm765_vm4, %v2482_v31, %v2504_v47  ;;  %v849_v30 = vsel %vm833_vm6, %v3302_v3, %v2515_v39  ;;  %v3310_v19 = vld [vmem:[#allocation11_spill] sm:$0xff]  ;;  %vm980_vm8 = vcmp.eq.s32.totalorder %v2666_v35, 1 }
 0x2c4   :  { %3294 = vst [vmem:[#allocation42_spill] sm:$0xff] %v2670_v63  ;;  %3295 = vst [vmem:[#allocation43_spill] sm:$0xff] %v2672_v45  ;;  %v2683_v43 = vmul.f32 %v2548_v13, %v589_v60  ;;  %v2686_v6 = vmul.f32 %v2550_v34, %v589_v60  ;;  %v2689_v14 = vmul.f32 %v2554_v56, %v589_v60  ;;  %v614_v2 = vsub.f32 2.0, %v613_v5 }
 0x2c5   :  { %3298 = vst [vmem:[#allocation46_spill] sm:$0xff] %v2680_v25  ;;  %3301 = vst [vmem:[#allocation49_spill] sm:$0xff] %v2691_v37  ;;  %v1783_v9 = vpop.eup %1782  ;;  %v2701_v13 = vsel %vm765_vm4, %v2504_v47, %v2445_v15  ;;  %v834_v34 = vsel %vm833_vm6, %v2515_v39, %v2506_v62  ;;  %v835_v15 = vsel %vm833_vm6, %v2506_v62, %v2524_v20  ;;  %v3309_v25 = vld [vmem:[#allocation15_spill] sm:$0xff]  ;;  %vm1067_vm9 = vcmp.eq.s32.totalorder %v2664_v26, 2 }
 0x2c6   :  { %3299 = vst [vmem:[#allocation47_spill] sm:$0xff] %v2686_v6  ;;  %3300 = vst [vmem:[#allocation48_spill] sm:$0xff] %v2689_v14  ;;  %v639_v56 = vmul.f32 %v1783_v9, %v637_v38  ;;  %v923_v42 = vmul.f32 %v3303_v36, %v2683_v43  ;;  %v931_v31 = vmul.f32 %v2686_v6, %v2047_v27  ;;  %vm1068_vm10 = vcmp.eq.s32.totalorder %v2666_v35, 2 }
 0x2c7   :  { %v615_v48 = vmul.f32 %v1781_v0, %v614_v2  ;;  %v836_v47 = vsel %vm833_vm6, %v2524_v20, %v2517_v7  ;;  %v2722_v38 = vsel %vm833_vm6, %v2517_v7, %v2540_v46  ;;  %v2727_v5 = vsel %vm833_vm6, %v2540_v46, %v2526_v22  ;;  %v3307_v2 = vld [vmem:[#allocation19_spill] sm:$0xff] }
 0x2c8   :  { %v640_v39 = vsub.f32 2.0, %v639_v56  ;;  %v939_v29 = vadd.f32 %v931_v31, %v923_v42  ;;  %v947_v23 = vmul.f32 %v2334_v58, %v2689_v14  ;;  %v2732_v62 = vmul.f32 %v2564_v44, %v589_v60 }
 0x2c9   :  { %v2735_v20 = vmul.f32 %v2574_v18, %v615_v48  ;;  %v2738_v52 = vmul.f32 %v2581_v40, %v615_v48  ;;  %v2743_v7 = vsel %vm833_vm6, %v2526_v22, %v2566_v16  ;;  %v924_v28 = vmul.f32 %v3305_v21, %v2683_v43  ;;  %v3306_v40 = vld [vmem:[#allocation23_spill] sm:$0xff] }
 0x2ca   :  { %3304 = vst [vmem:[#allocation33_spill] sm:$0xff] %v2732_v62  ;;  %v641_v46 = vmul.f32 %v1783_v9, %v640_v39  ;;  %v932_v0 = vmul.f32 %v2686_v6, %v2057_v32  ;;  %v2749_v44 = vadd.f32 %v947_v23, %v939_v29  ;;  %v2752_v18 = vmul.f32 %v2587_v4, %v615_v48 }
 0x2cb   :  { %v1025_v60 = vmul.f32 %v3306_v40, %v2738_v52  ;;  %v1026_v56 = vmul.f32 %v3307_v2, %v2738_v52  ;;  %v2761_v22 = vsel %vm833_vm6, %v2566_v16, %v3302_v3  ;;  %v2764_v9 = vmul.f32 %v2596_v57, %v615_v48  ;;  %v3308_v3 = vld [vmem:[#allocation30_spill] sm:$0xff] }
 0x2cc   :  { %v2767_v42 = vmul.f32 %v2602_v11, %v641_v46  ;;  %v643_v4 = vmul.f32 %v2608_v41, %v641_v46  ;;  %v948_v31 = vmul.f32 %v2340_v61, %v2689_v14  ;;  %v2773_v39 = vmul.f32 %v2612_v54, %v641_v46 }
 0x2cd   :  { %v1017_v29 = vmul.f32 %v2696_v8, %v2735_v20  ;;  %v1018_v16 = vmul.f32 %v2701_v13, %v2735_v20  ;;  %v963_v57 = vmul.f32 %v2418_v53, %v2732_v62  ;;  %v940_v41 = vadd.f32 %v932_v0, %v924_v28 }
 0x2ce   :  { %v1107_v11 = vmul.f32 %v2641_v50, %v643_v4  ;;  %v1108_v48 = vmul.f32 %v3308_v3, %v643_v4  ;;  %v2785_v23 = vmul.f32 %v2421_v59, %v2732_v62  ;;  %v1041_v54 = vmul.f32 %v2752_v18, %v2219_v51 }
 0x2cf   :  { %v1042_v45 = vmul.f32 %v2752_v18, %v2230_v55  ;;  %v1033_v63 = vadd.f32 %v1025_v60, %v1017_v29  ;;  %v1034_v37 = vadd.f32 %v1026_v56, %v1018_v16  ;;  %v1057_v53 = vmul.f32 %v3309_v25, %v2764_v9  ;;  %v3311_v29 = vld [vmem:[#allocation31_spill] sm:$0xff] }
 0x2d0   :  { %v1058_v10 = vmul.f32 %v3310_v19, %v2764_v9  ;;  %v1099_v28 = vmul.f32 %v849_v30, %v2767_v42  ;;  %v1100_v0 = vmul.f32 %v834_v34, %v2767_v42  ;;  %v1123_v14 = vmul.f32 %v3303_v36, %v2773_v39 }
 0x2d1   :  { %v1049_v59 = vadd.f32 %v1041_v54, %v1033_v63  ;;  %v1050_v62 = vadd.f32 %v1042_v45, %v1034_v37  ;;  %v1124_v6 = vmul.f32 %v3305_v21, %v2773_v39  ;;  %v1109_v16 = vmul.f32 %v3311_v29, %v643_v4  ;;  %v3314_v45 = vld [vmem:[#allocation18_spill] sm:$0xff] }
 0x2d2   :  { %v1115_v60 = vadd.f32 %v1107_v11, %v1099_v28  ;;  %v1116_v56 = vadd.f32 %v1108_v48, %v1100_v0  ;;  %v1110_v25 = vmul.f32 %v2646_v33, %v643_v4  ;;  %v645_v19 = vmul.f32 %v2619_v1, %v641_v46  ;;  %v3317_v1 = vld [vmem:[#allocation32_spill] sm:$0xff]  ;;  %v3319_v0 = vld [vmem:[#allocation6_spill] sm:$0xff] }
 0x2d3   :  { %v2804_v24 = vadd.f32 %v1057_v53, %v1049_v59  ;;  %v2806_v30 = vadd.f32 %v1058_v10, %v1050_v62  ;;  %v2810_v63 = vmul.f32 %v3314_v45, %v2683_v43  ;;  %v1101_v54 = vmul.f32 %v835_v15, %v2767_v42 }
 0x2d4   :  { %v1131_v37 = vadd.f32 %v1123_v14, %v1115_v60  ;;  %v1132_v34 = vadd.f32 %v1124_v6, %v1116_v56  ;;  %v1102_v11 = vmul.f32 %v836_v47, %v2767_v42  ;;  %v2815_v48 = vmul.f32 %v2696_v8, %v643_v4  ;;  %v3318_v6 = vld [vmem:[#allocation20_spill] sm:$0xff]  ;;  %v3320_v60 = vld [vmem:[#allocation7_spill] sm:$0xff] }
 0x2d5   :  { %3312 = vst [vmem:[#allocation16_spill] sm:$0xff] %v2804_v24  ;;  %3313 = vst [vmem:[#allocation17_spill] sm:$0xff] %v2806_v30  ;;  %v2818_v28 = vmul.f32 %v2701_v13, %v643_v4  ;;  %v1111_v46 = vmul.f32 %v3317_v1, %v643_v4  ;;  %v1112_v10 = vmul.f32 %v2653_v49, %v643_v4  ;;  %vm1155_vm11 = vcmp.eq.s32.totalorder %v2664_v26, 3 }
 0x2d6   :  { %3315 = vst [vmem:[#allocation23_spill] sm:$0xff] %v2815_v48  ;;  %v1125_v14 = vmul.f32 %v3314_v45, %v2773_v39  ;;  %v1126_v15 = vmul.f32 %v3318_v6, %v2773_v39  ;;  %v1117_v62 = vadd.f32 %v1109_v16, %v1101_v54  ;;  %v1118_v47 = vadd.f32 %v1110_v25, %v1102_v11  ;;  %v3321_v25 = vld [vmem:[#allocation21_spill] sm:$0xff]  ;;  %v3322_v54 = vld [vmem:[#allocation22_spill] sm:$0xff] }
 0x2d7   :  { %3316 = vst [vmem:[#allocation19_spill] sm:$0xff] %v2818_v28  ;;  %v1139_v8 = vmul.f32 %v645_v19, %v2047_v27  ;;  %v1140_v13 = vmul.f32 %v645_v19, %v2057_v32  ;;  %v1103_v53 = vmul.f32 %v2722_v38, %v2767_v42  ;;  %v1104_v4 = vmul.f32 %v2727_v5, %v2767_v42  ;;  %v3323_v38 = vld [vmem:[#allocation8_spill] sm:$0xff]  ;;  %v3324_v5 = vld [vmem:[#allocation9_spill] sm:$0xff] }
 0x2d8   :  { %v1141_v59 = vmul.f32 %v645_v19, %v3319_v0  ;;  %v1142_v56 = vmul.f32 %v645_v19, %v3320_v60  ;;  %v1133_v30 = vadd.f32 %v1125_v14, %v1117_v62  ;;  %v1134_v24 = vadd.f32 %v1126_v15, %v1118_v47 }
 0x2d9   :  { %v1127_v16 = vmul.f32 %v3321_v25, %v2773_v39  ;;  %v1128_v11 = vmul.f32 %v3322_v54, %v2773_v39  ;;  %v1119_v49 = vadd.f32 %v1111_v46, %v1103_v53  ;;  %v1120_v1 = vadd.f32 %v1112_v10, %v1104_v4 }
 0x2da   :  { %v1147_v28 = vadd.f32 %v1139_v8, %v1131_v37  ;;  %v1148_v48 = vadd.f32 %v1140_v13, %v1132_v34  ;;  %v2841_v45 = vmul.f32 %v645_v19, %v3323_v38  ;;  %v2844_v33 = vmul.f32 %v645_v19, %v3324_v5  ;;  %v3327_v13 = vld [vmem:[#allocation47_spill] sm:$0xff] }
 0x2db   :  { %v2847_v14 = vadd.f32 %v1127_v16, %v1119_v49  ;;  %v2849_v15 = vadd.f32 %v1128_v11, %v1120_v1  ;;  %v956_v62 = vadd.f32 %v948_v31, %v940_v41  ;;  %v971_v47 = vadd.f32 %v963_v57, %v2749_v44  ;;  %v3330_v16 = vld [vmem:[#allocation12_spill] sm:$0xff] }
 0x2dc   :  { %v2856_v37 = vmul.f32 %v3306_v40, %v2773_v39  ;;  %v2860_v34 = vmul.f32 %v3307_v2, %v2773_v39  ;;  %v1011_v49 = vmul.f32 %v2641_v50, %v2735_v20  ;;  %v1012_v31 = vmul.f32 %v3308_v3, %v2735_v20 }
 0x2dd   :  { %vm1156_vm12 = vcmp.eq.s32.totalorder %v2666_v35, 3  ;;  %v2868_v44 = vmul.f32 %v645_v19, %v2219_v51  ;;  %v2871_v57 = vmul.f32 %v645_v19, %v2230_v55  ;;  %v972_v41 = vadd.f32 %v2785_v23, %v956_v62 }
 0x2de   :  { %v1019_v39 = vmul.f32 %v3303_v36, %v2738_v52  ;;  %v2876_v1 = vadd.f32 %v1141_v59, %v1133_v30  ;;  %v2878_v46 = vadd.f32 %v1142_v56, %v1134_v24  ;;  %v1105_v50 = vmul.f32 %v2743_v7, %v2767_v42  ;;  %v3325_v30 = vld [vmem:[#allocation34_spill] sm:$0xff] }
 0x2df   :  { %v1020_v3 = vmul.f32 %v3305_v21, %v2738_v52  ;;  %v1106_v10 = vmul.f32 %v2761_v22, %v2767_v42  ;;  %v1035_v23 = vmul.f32 %v2752_v18, %v2047_v27  ;;  %v1036_v36 = vmul.f32 %v2752_v18, %v2057_v32  ;;  %v3326_v27 = vld [vmem:[#allocation35_spill] sm:$0xff]  ;;  %v3329_v59 = vld [vmem:[#allocation10_spill] sm:$0xff] }
 0x2e0   :  { %v1027_v19 = vadd.f32 %v1019_v39, %v1011_v49  ;;  %vm981_vm13 = vcmp.eq.s32.totalorder %v2668_v12, 1  ;;  %vm982_vm14 = vcmp.eq.s32.totalorder %v2674_v17, 1  ;;  %v1051_v7 = vmul.f32 %v2334_v58, %v2764_v9  ;;  %v3331_v49 = vld [vmem:[#allocation33_spill] sm:$0xff]  ;;  %v3333_v39 = vld [vmem:[#allocation26_spill] sm:$0xff] }
 0x2e1   :  { %v1028_v24 = vadd.f32 %v1020_v3, %v1012_v31  ;;  %v1052_v21 = vmul.f32 %v2340_v61, %v2764_v9  ;;  %v1003_v22 = vsel %vm979_vm7, %v971_v47, %v3325_v30  ;;  %v1004_v32 = vsel %vm980_vm8, %v972_v41, %v3326_v27  ;;  %v3328_v61 = vld [vmem:[#allocation48_spill] sm:$0xff] }
 0x2e2   :  { %v1043_v42 = vadd.f32 %v1035_v23, %v1027_v19  ;;  %v926_v8 = vmul.f32 %v3318_v6, %v2683_v43  ;;  %v933_v53 = vmul.f32 %v3327_v13, %v3319_v0  ;;  %v934_v58 = vmul.f32 %v3327_v13, %v3320_v60  ;;  %v3332_v31 = vld [vmem:[#allocation24_spill] sm:$0xff] }
 0x2e3   :  { %v1044_v4 = vadd.f32 %v1036_v36, %v1028_v24  ;;  %v949_v56 = vmul.f32 %v3329_v59, %v3328_v61  ;;  %v950_v11 = vmul.f32 %v3330_v16, %v3328_v61  ;;  %vm1069_vm15 = vcmp.eq.s32.totalorder %v2668_v12, 2  ;;  %v3334_v24 = vld [vmem:[#allocation38_spill] sm:$0xff] }
 0x2e4   :  { %v1059_v62 = vadd.f32 %v1051_v7, %v1043_v42  ;;  %v941_v47 = vadd.f32 %v933_v53, %v2810_v63  ;;  %v965_v41 = vmul.f32 %v3332_v31, %v3331_v49  ;;  %v966_v3 = vmul.f32 %v3333_v39, %v3331_v49  ;;  %v3335_v42 = vld [vmem:[#allocation18_spill] sm:$0xff]  ;;  %v3336_v39 = vld [vmem:[#allocation36_spill] sm:$0xff] }
 0x2e5   :  { %vm1070_vm0 = vcmp.eq.s32.totalorder %v2674_v17, 2  ;;  %vm1157_vm1 = vcmp.eq.s32.totalorder %v2668_v12, 3  ;;  %v1060_v19 = vadd.f32 %v1052_v21, %v1044_v4  ;;  %v942_v23 = vadd.f32 %v934_v58, %v926_v8 }
 0x2e6   :  { %v1013_v36 = vmul.f32 %v3311_v29, %v2735_v20  ;;  %v1014_v7 = vmul.f32 %v3334_v24, %v2735_v20  ;;  %vm1158_vm2 = vcmp.eq.s32.totalorder %v2674_v17, 3  ;;  %v1091_v63 = vsel %vm1067_vm9, %v1059_v62, %v1003_v22 }
 0x2e7   :  { %v957_v30 = vadd.f32 %v949_v56, %v941_v47  ;;  %v1021_v27 = vmul.f32 %v3335_v42, %v2738_v52  ;;  %v1022_v53 = vmul.f32 %v3318_v6, %v2738_v52  ;;  %v1092_v21 = vsel %vm1068_vm10, %v1060_v19, %v1004_v32  ;;  %v3337_v19 = vld [vmem:[#allocation37_spill] sm:$0xff] }
 0x2e8   :  { %v2935_v29 = vsel %vm1155_vm11, %v1147_v28, %v1091_v63  ;;  %v958_v8 = vadd.f32 %v950_v11, %v942_v23  ;;  %v1037_v4 = vmul.f32 %v2752_v18, %v3319_v0  ;;  %v2941_v22 = vsel %vm1156_vm12, %v1148_v48, %v1092_v21  ;;  %v3338_v23 = vld [vmem:[#allocation23_spill] sm:$0xff] }
 0x2e9   :  { %v1187_v58 = vmul.f32 0.70710677, %v2935_v29  ;;  %v973_v56 = vadd.f32 %v965_v41, %v957_v30  ;;  %v1029_v62 = vadd.f32 %v1021_v27, %v1013_v36  ;;  %v1188_v6 = vmul.f32 0.70710677, %v2941_v22  ;;  %v3339_v63 = vld [vmem:[#allocation19_spill] sm:$0xff] }
 0x2ea   :  { %v974_v47 = vadd.f32 %v966_v3, %v958_v8  ;;  %v1030_v32 = vadd.f32 %v1022_v53, %v1014_v7  ;;  %v1038_v26 = vmul.f32 %v2752_v18, %v3320_v60  ;;  %v1053_v0 = vmul.f32 %v3329_v59, %v2764_v9 }
 0x2eb   :  { %v1195_v28 = vand.u32 2147483647, %v1187_v58  ;;  %v1045_v11 = vadd.f32 %v1037_v4, %v1029_v62  ;;  %v1054_v35 = vmul.f32 %v3330_v16, %v2764_v9  ;;  %v1196_v48 = vand.u32 2147483647, %v1188_v6 }
 0x2ec   :  { %v1046_v31 = vadd.f32 %v1038_v26, %v1030_v32  ;;  %v1005_v41 = vsel %vm981_vm13, %v973_v56, %v3336_v39  ;;  %v1006_v3 = vsel %vm982_vm14, %v974_v47, %v3337_v19  ;;  %v1121_v60 = vadd.f32 %v3338_v23, %v1105_v50  ;;  %v3340_v47 = vld [vmem:[#allocation44_spill] sm:$0xff]  ;;  %v3341_v26 = vld [vmem:[#allocation45_spill] sm:$0xff] }
 0x2ed   :  { %v1203_v36 = vmul.f32 0.3275911, %v1195_v28  ;;  %v1323_v24 = vsub.f32 0.0, %v1195_v28  ;;  %v1061_v7 = vadd.f32 %v1053_v0, %v1045_v11  ;;  %v1122_v59 = vadd.f32 %v3339_v63, %v1106_v10 }
 0x2ee   :  { %v1204_v30 = vmul.f32 0.3275911, %v1196_v48  ;;  %v1062_v42 = vadd.f32 %v1054_v35, %v1046_v31  ;;  %v927_v16 = vmul.f32 %v3321_v25, %v2683_v43  ;;  %v928_v21 = vmul.f32 %v3322_v54, %v2683_v43  ;;  %v3343_v31 = vld [vmem:[#allocation14_spill] sm:$0xff] }
 0x2ef   :  { %v1211_v27 = vadd.f32 1.0, %v1203_v36  ;;  %v1093_v53 = vsel %vm1069_vm15, %v1061_v7, %v1005_v41  ;;  %v935_v50 = vmul.f32 %v3327_v13, %v3323_v38  ;;  %v1331_v4 = vmul.f32 %v1323_v24, %v1195_v28  ;;  %v3345_v7 = vld [vmem:[#allocation28_spill] sm:$0xff] }
 0x2f0   :  { %v1212_v8 = vadd.f32 1.0, %v1204_v30  ;;  %v1094_v10 = vsel %vm1070_vm0, %v1062_v42, %v1006_v3  ;;  %v2972_v58 = vsel %vm1157_vm1, %v2876_v1, %v1093_v53  ;;  %v2976_v56 = vadd.f32 %v2841_v45, %v2847_v14  ;;  %v3346_v42 = vld [vmem:[#allocation32_spill] sm:$0xff] }
 0x2f1   :  { %1784 = vrcp.f32 %v1211_v27  ;;  %v2981_v62 = vsel %vm1158_vm2, %v2878_v46, %v1094_v10  ;;  %v1189_v6 = vmul.f32 0.70710677, %v2972_v58  ;;  %vm983_vm3 = vcmp.eq.s32.totalorder %v3340_v47, 1  ;;  %v3342_v46 = vld [vmem:[#allocation13_spill] sm:$0xff] }
 0x2f2   :  { %1786 = vrcp.f32 %v1212_v8  ;;  %v1324_v32 = vsub.f32 0.0, %v1196_v48  ;;  %v1190_v12 = vmul.f32 0.70710677, %v2981_v62  ;;  %v936_v1 = vmul.f32 %v3327_v13, %v3324_v5 }
 0x2f3   :  { %vm984_vm4 = vcmp.eq.s32.totalorder %v3341_v26, 1  ;;  %v1137_v45 = vadd.f32 %v2856_v37, %v1121_v60  ;;  %v2990_v14 = vand.u32 2147483647, %v1189_v6  ;;  %v943_v17 = vadd.f32 %v935_v50, %v927_v16  ;;  %v3344_v37 = vld [vmem:[#allocation27_spill] sm:$0xff] }
 0x2f4   :  { %v951_v28 = vmul.f32 %v3342_v46, %v3328_v61  ;;  %v1339_v11 = vmul.f32 1.442695, %v1331_v4  ;;  %v2994_v0 = vand.u32 2147483647, %v1190_v12  ;;  %v944_v35 = vadd.f32 %v936_v1, %v928_v21  ;;  %v3347_v21 = vld [vmem:[#allocation39_spill] sm:$0xff] }
 0x2f5   :  { %v952_v39 = vmul.f32 %v3343_v31, %v3328_v61  ;;  %v1138_v41 = vadd.f32 %v2860_v34, %v1122_v59  ;;  %v1205_v19 = vmul.f32 0.3275911, %v2990_v14  ;;  %v967_v23 = vmul.f32 %v3344_v37, %v3331_v49 }
 0x2f6   :  { %v959_v3 = vadd.f32 %v951_v28, %v943_v17  ;;  %v1332_v60 = vmul.f32 %v1324_v32, %v1196_v48  ;;  %v1206_v36 = vmul.f32 0.3275911, %v2994_v0  ;;  %v968_v63 = vmul.f32 %v3345_v7, %v3331_v49  ;;  %v3349_v28 = vld [vmem:[#allocation40_spill] sm:$0xff] }
 0x2f7   :  { %v960_v24 = vadd.f32 %v952_v39, %v944_v35  ;;  %vm1071_vm5 = vcmp.eq.s32.totalorder %v3340_v47, 2  ;;  %vm1072_vm6 = vcmp.eq.s32.totalorder %v3341_v26, 2  ;;  %v1152_v34 = vadd.f32 %v2844_v33, %v2849_v15 }
 0x2f8   :  { %v3009_v59 = vadd.f32 1.0, %v1205_v19  ;;  %v975_v30 = vadd.f32 %v967_v23, %v959_v3  ;;  %v1015_v16 = vmul.f32 %v3346_v42, %v2735_v20  ;;  %vm1159_vm7 = vcmp.eq.s32.totalorder %v3340_v47, 3  ;;  %v3354_v42 = vld [vmem:[#allocation29_spill] sm:$0xff] }
 0x2f9   :  { %vm1160_vm8 = vcmp.eq.s32.totalorder %v3341_v26, 3  ;;  %1788 = vpow2.f32 %v1339_v11  ;;  %v1214_v48 = vadd.f32 1.0, %v1206_v36  ;;  %v976_v53 = vadd.f32 %v968_v63, %v960_v24 }
 0x2fa   :  { %v1016_v50 = vmul.f32 %v3347_v21, %v2735_v20  ;;  %v3018_v4 = vadd.f32 %v2868_v44, %v1137_v45  ;;  %1790 = vrcp.f32 %v3009_v59  ;;  %v1023_v33 = vmul.f32 %v3321_v25, %v2738_v52  ;;  %v3348_v25 = vld [vmem:[#allocation46_spill] sm:$0xff] }
 0x2fb   :  { %v1024_v15 = vmul.f32 %v3322_v54, %v2738_v52  ;;  %v3026_v10 = vadd.f32 %v2871_v57, %v1138_v41  ;;  %v1341_v6 = vmul.f32 1.442695, %v1332_v60  ;;  %1792 = vrcp.f32 %v1214_v48  ;;  %v1785_v12 = vpop.eup %1784  ;;  %v3350_v41 = vld [vmem:[#allocation41_spill] sm:$0xff] }
 0x2fc   :  { %v1325_v32 = vsub.f32 0.0, %v2990_v14  ;;  %v1031_v20 = vadd.f32 %v1023_v33, %v1015_v16  ;;  %v1039_v44 = vmul.f32 %v2752_v18, %v3323_v38  ;;  %v1040_v45 = vmul.f32 %v2752_v18, %v3324_v5  ;;  %v1787_v17 = vpop.eup %1786  ;;  %v3351_v5 = vld [vmem:[#allocation49_spill] sm:$0xff] }
 0x2fd   :  { %v1032_v1 = vadd.f32 %v1024_v15, %v1016_v50  ;;  %vm985_vm9 = vcmp.eq.s32.totalorder %v3348_v25, 1  ;;  %v1227_v52 = vmul.f32 %v1785_v12, %v1211_v27  ;;  %v1055_v54 = vmul.f32 %v3342_v46, %v2764_v9  ;;  %v3355_v15 = vld [vmem:[#allocation25_spill] sm:$0xff] }
 0x2fe   :  { %v1056_v57 = vmul.f32 %v3343_v31, %v2764_v9  ;;  %v1007_v11 = vsel %vm983_vm3, %v975_v30, %v3349_v28  ;;  %v1228_v35 = vmul.f32 %v1787_v17, %v1212_v8  ;;  %v1047_v39 = vadd.f32 %v1039_v44, %v1031_v20 }
 0x2ff   :  { %v1048_v38 = vadd.f32 %v1040_v45, %v1032_v1  ;;  %v1008_v18 = vsel %vm984_vm4, %v976_v53, %v3350_v41  ;;  %vm986_vm10 = vcmp.eq.s32.totalorder %v3351_v5, 1  ;;  %vm1073_vm11 = vcmp.eq.s32.totalorder %v3348_v25, 2  ;;  %v3358_v41 = vld [vmem:[#allocation16_spill] sm:$0xff] }
 0x300   :  { %v1235_v27 = vsub.f32 2.0, %v1227_v52  ;;  %v929_v46 = vmul.f32 %v3306_v40, %v2683_v43  ;;  %v930_v9 = vmul.f32 %v3307_v2, %v2683_v43  ;;  %v937_v8 = vmul.f32 %v3327_v13, %v2219_v51  ;;  %v3352_v40 = vld [vmem:[#allocation15_spill] sm:$0xff] }
 0x301   :  { %v1236_v31 = vsub.f32 2.0, %v1228_v35  ;;  %v1063_v19 = vadd.f32 %v1055_v54, %v1047_v39  ;;  %v1064_v3 = vadd.f32 %v1056_v57, %v1048_v38  ;;  %v938_v37 = vmul.f32 %v3327_v13, %v2230_v55  ;;  %v3353_v43 = vld [vmem:[#allocation11_spill] sm:$0xff]  ;;  %v3356_v54 = vld [vmem:[#allocation42_spill] sm:$0xff] }
 0x302   :  { %vm1074_vm12 = vcmp.eq.s32.totalorder %v3351_v5, 2  ;;  %vm1161_vm13 = vcmp.eq.s32.totalorder %v3348_v25, 3  ;;  %v3056_v23 = vmul.f32 %v1785_v12, %v1235_v27  ;;  %v945_v60 = vadd.f32 %v937_v8, %v929_v46  ;;  %v3357_v38 = vld [vmem:[#allocation43_spill] sm:$0xff] }
 0x303   :  { %v953_v36 = vmul.f32 %v3352_v40, %v3328_v61  ;;  %v954_v2 = vmul.f32 %v3353_v43, %v3328_v61  ;;  %vm1162_vm14 = vcmp.eq.s32.totalorder %v3351_v5, 3  ;;  %v3063_v51 = vmul.f32 %v1787_v17, %v1236_v31  ;;  %v3069_v7 = vpop.eup %1788 }
 0x304   :  { %v1095_v55 = vsel %vm1071_vm5, %v1063_v19, %v1007_v11  ;;  %v1096_v13 = vsel %vm1072_vm6, %v1064_v3, %v1008_v18  ;;  %v946_v24 = vadd.f32 %v938_v37, %v930_v9  ;;  %v969_v16 = vmul.f32 %v3354_v42, %v3331_v49  ;;  %v1791_v53 = vpop.eup %1790 }
 0x305   :  { %v3074_v63 = vsel %vm1159_vm7, %v2976_v56, %v1095_v55  ;;  %v3078_v61 = vsel %vm1160_vm8, %v1152_v34, %v1096_v13  ;;  %v961_v30 = vadd.f32 %v953_v36, %v945_v60  ;;  %v970_v12 = vmul.f32 %v3355_v15, %v3331_v49  ;;  %v1793_v47 = vpop.eup %1792 }
 0x306   :  { %v1191_v21 = vmul.f32 0.70710677, %v3074_v63  ;;  %v1192_v50 = vmul.f32 0.70710677, %v3078_v61  ;;  %v962_v33 = vadd.f32 %v954_v2, %v946_v24  ;;  %v1229_v56 = vmul.f32 %v1791_v53, %v3009_v59 }
 0x307   :  { %v1326_v26 = vsub.f32 0.0, %v2994_v0  ;;  %v977_v34 = vadd.f32 %v969_v16, %v961_v30  ;;  %v1251_v20 = vmul.f32 1.0614054, %v3056_v23  ;;  %v1230_v1 = vmul.f32 %v1793_v47, %v1214_v48 }
 0x308   :  { %v1199_v44 = vand.u32 2147483647, %v1191_v21  ;;  %v1200_v45 = vand.u32 2147483647, %v1192_v50  ;;  %v978_v17 = vadd.f32 %v970_v12, %v962_v33  ;;  %1794 = vpow2.f32 %v1341_v6 }
 0x309   :  { %v1237_v52 = vsub.f32 2.0, %v1229_v56  ;;  %v1009_v57 = vsel %vm985_vm9, %v977_v34, %v3356_v54  ;;  %v1252_v49 = vmul.f32 1.0614054, %v3063_v51  ;;  %v1238_v28 = vsub.f32 2.0, %v1230_v1 }
 0x30a   :  { %v1333_v59 = vmul.f32 %v1325_v32, %v2990_v14  ;;  %v1207_v11 = vmul.f32 0.3275911, %v1199_v44  ;;  %v1208_v35 = vmul.f32 0.3275911, %v1200_v45  ;;  %v1334_v48 = vmul.f32 %v1326_v26, %v2994_v0  ;;  %v3359_v14 = vld [vmem:[#allocation17_spill] sm:$0xff] }
 0x30b   :  { %v3094_v39 = vmul.f32 %v1791_v53, %v1237_v52  ;;  %v1010_v6 = vsel %vm986_vm10, %v978_v17, %v3357_v38  ;;  %v1097_v18 = vsel %vm1073_vm11, %v3358_v41, %v1009_v57  ;;  %v3103_v27 = vmul.f32 %v1793_v47, %v1238_v28 }
 0x30c   :  { %v1215_v46 = vadd.f32 1.0, %v1207_v11  ;;  %v1216_v9 = vadd.f32 1.0, %v1208_v35  ;;  %v1259_v8 = vadd.f32 -1.4531521, %v1251_v20  ;;  %v1098_v32 = vsel %vm1074_vm12, %v3359_v14, %v1010_v6 }
 0x30d   :  { %v3111_v0 = vsel %vm1161_vm13, %v3018_v4, %v1097_v18  ;;  %v1253_v31 = vmul.f32 1.0614054, %v3094_v39  ;;  %v1260_v19 = vadd.f32 -1.4531521, %v1252_v49  ;;  %v3117_v3 = vsel %vm1162_vm14, %v3026_v10, %v1098_v32 }
 0x30e   :  { %1796 = vrcp.f32 %v1215_v46  ;;  %v1193_v37 = vmul.f32 0.70710677, %v3111_v0  ;;  %v1343_v60 = vmul.f32 1.442695, %v1333_v59  ;;  %v1194_v40 = vmul.f32 0.70710677, %v3117_v3 }
 0x30f   :  { %1798 = vrcp.f32 %v1216_v9  ;;  %v1254_v36 = vmul.f32 1.0614054, %v3103_v27  ;;  %v1345_v25 = vmul.f32 1.442695, %v1334_v48  ;;  %v1261_v43 = vadd.f32 -1.4531521, %v1253_v31 }
 0x310   :  { %v1201_v4 = vand.u32 2147483647, %v1193_v37  ;;  %v1267_v2 = vmul.f32 %v1259_v8, %v3056_v23  ;;  %v1327_v55 = vsub.f32 0.0, %v1199_v44  ;;  %v1202_v13 = vand.u32 2147483647, %v1194_v40 }
 0x311   :  { %v1262_v24 = vadd.f32 -1.4531521, %v1254_v36  ;;  %v1268_v5 = vmul.f32 %v1260_v19, %v3063_v51  ;;  %v1328_v10 = vsub.f32 0.0, %v1200_v45  ;;  %v1269_v42 = vmul.f32 %v1261_v43, %v3094_v39 }
 0x312   :  { %v1209_v30 = vmul.f32 0.3275911, %v1201_v4  ;;  %v1275_v16 = vadd.f32 1.4214138, %v1267_v2  ;;  %v1795_v53 = vpop.eup %1794  ;;  %1800 = vpow2.f32 %v1343_v60  ;;  %v1210_v21 = vmul.f32 0.3275911, %v1202_v13 }
 0x313   :  { %v1270_v50 = vmul.f32 %v1262_v24, %v3103_v27  ;;  %v1276_v33 = vadd.f32 1.4214138, %v1268_v5  ;;  %1802 = vpow2.f32 %v1345_v25  ;;  %v1277_v12 = vadd.f32 1.4214138, %v1269_v42 }
 0x314   :  { %v1217_v15 = vadd.f32 1.0, %v1209_v30  ;;  %v1283_v47 = vmul.f32 %v1275_v16, %v3056_v23  ;;  %v1335_v56 = vmul.f32 %v1327_v55, %v1199_v44  ;;  %v1218_v26 = vadd.f32 1.0, %v1210_v21 }
 0x315   :  { %v1278_v34 = vadd.f32 1.4214138, %v1270_v50  ;;  %v1284_v20 = vmul.f32 %v1276_v33, %v3063_v51  ;;  %v1336_v1 = vmul.f32 %v1328_v10, %v1200_v45  ;;  %v1285_v17 = vmul.f32 %v1277_v12, %v3094_v39 }
 0x316   :  { %1804 = vrcp.f32 %v1217_v15  ;;  %v1291_v52 = vadd.f32 -0.28449672, %v1283_v47  ;;  %v1329_v28 = vsub.f32 0.0, %v1201_v4  ;;  %v1347_v48 = vmul.f32 1.442695, %v1335_v56 }
 0x317   :  { %1806 = vrcp.f32 %v1218_v26  ;;  %v1286_v54 = vmul.f32 %v1278_v34, %v3103_v27  ;;  %v1292_v57 = vadd.f32 -0.28449672, %v1284_v20  ;;  %v1293_v59 = vadd.f32 -0.28449672, %v1285_v17 }
 0x318   :  { %v1797_v49 = vpop.eup %1796  ;;  %v1299_v11 = vmul.f32 %v1291_v52, %v3056_v23  ;;  %v1349_v41 = vmul.f32 1.442695, %v1336_v1  ;;  %v1330_v32 = vsub.f32 0.0, %v1202_v13  ;;  %v1337_v60 = vmul.f32 %v1329_v28, %v1201_v4 }
 0x319   :  { %v1799_v35 = vpop.eup %1798  ;;  %v1231_v44 = vmul.f32 %v1797_v49, %v1215_v46  ;;  %v1294_v38 = vadd.f32 -0.28449672, %v1286_v54  ;;  %v1300_v6 = vmul.f32 %v1292_v57, %v3063_v51  ;;  %v1301_v18 = vmul.f32 %v1293_v59, %v3094_v39 }
 0x31a   :  { %v1232_v45 = vmul.f32 %v1799_v35, %v1216_v9  ;;  %v1307_v8 = vadd.f32 0.2548296, %v1299_v11  ;;  %1808 = vpow2.f32 %v1347_v48  ;;  %v1338_v10 = vmul.f32 %v1330_v32, %v1202_v13 }
 0x31b   :  { %v1239_v14 = vsub.f32 2.0, %v1231_v44  ;;  %v1302_v31 = vmul.f32 %v1294_v38, %v3103_v27  ;;  %v1308_v19 = vadd.f32 0.2548296, %v1300_v6  ;;  %v1309_v40 = vadd.f32 0.2548296, %v1301_v18 }
 0x31c   :  { %v1240_v37 = vsub.f32 2.0, %v1232_v45  ;;  %v1315_v36 = vmul.f32 %v1307_v8, %v3056_v23  ;;  %v1801_v46 = vpop.eup %1800  ;;  %1810 = vpow2.f32 %v1349_v41  ;;  %v1351_v16 = vmul.f32 1.442695, %v1337_v60 }
 0x31d   :  { %v3135_v25 = vmul.f32 %v1797_v49, %v1239_v14  ;;  %v1310_v43 = vadd.f32 0.2548296, %v1302_v31  ;;  %v1316_v9 = vmul.f32 %v1308_v19, %v3063_v51  ;;  %v1803_v2 = vpop.eup %1802  ;;  %v1317_v24 = vmul.f32 %v1309_v40, %v3094_v39 }
 0x31e   :  { %v3138_v55 = vmul.f32 %v1799_v35, %v1240_v37  ;;  %v1355_v5 = vmul.f32 %v3069_v7, %v1315_v36  ;;  %vm1363_vm15 = vcmp.ge.f32.partialorder %v2935_v29, 0.0  ;;  %vm1364_vm0 = vcmp.ge.f32.partialorder %v2941_v22, 0.0 }
 0x31f   :  { %v1255_v4 = vmul.f32 1.0614054, %v3135_v25  ;;  %v1318_v23 = vmul.f32 %v1310_v43, %v3103_v27  ;;  %v1356_v30 = vmul.f32 %v1795_v53, %v1316_v9  ;;  %v1357_v50 = vmul.f32 %v1801_v46, %v1317_v24 }
 0x320   :  { %v1805_v42 = vpop.eup %1804  ;;  %v1256_v21 = vmul.f32 1.0614054, %v3138_v55  ;;  %v1371_v51 = vsub.f32 2.0, %v1355_v5  ;;  %vm1365_vm1 = vcmp.ge.f32.partialorder %v2972_v58, 0.0  ;;  %vm1366_vm2 = vcmp.ge.f32.partialorder %v2981_v62, 0.0 }
 0x321   :  { %v1807_v33 = vpop.eup %1806  ;;  %v1233_v12 = vmul.f32 %v1805_v42, %v1217_v15  ;;  %v1263_v47 = vadd.f32 -1.4531521, %v1255_v4  ;;  %v1358_v56 = vmul.f32 %v1803_v2, %v1318_v23  ;;  %v1372_v34 = vsub.f32 2.0, %v1356_v30 }
 0x322   :  { %v1234_v39 = vmul.f32 %v1807_v33, %v1218_v26  ;;  %v1264_v20 = vadd.f32 -1.4531521, %v1256_v21  ;;  %v1373_v7 = vsub.f32 2.0, %v1357_v50  ;;  %v1379_v52 = vsel %vm1363_vm15, %v1371_v51, %v1355_v5  ;;  %v3360_v5 = vld [vmem:[#allocation5_spill] sm:$0xff] }
 0x323   :  { %v1241_v13 = vsub.f32 2.0, %v1233_v12  ;;  %v1271_v27 = vmul.f32 %v1263_v47, %v3135_v25  ;;  %v1374_v53 = vsub.f32 2.0, %v1358_v56  ;;  %v1380_v54 = vsel %vm1364_vm0, %v1372_v34, %v1356_v30 }
 0x324   :  { %v1242_v1 = vsub.f32 2.0, %v1234_v39  ;;  %v1272_v17 = vmul.f32 %v1264_v20, %v3138_v55  ;;  %v1381_v28 = vsel %vm1365_vm1, %v1373_v7, %v1357_v50  ;;  %v1387_v59 = vmul.f32 0.5, %v2935_v29  ;;  %v1809_v11 = vpop.eup %1808 }
 0x325   :  { %v3151_v15 = vmul.f32 %v1805_v42, %v1241_v13  ;;  %v1279_v26 = vadd.f32 1.4214138, %v1271_v27  ;;  %v1382_v48 = vsel %vm1366_vm2, %v1374_v53, %v1358_v56  ;;  %v1388_v38 = vmul.f32 0.5, %v2941_v22 }
 0x326   :  { %v3153_v57 = vmul.f32 %v1807_v33, %v1242_v1  ;;  %v1280_v49 = vadd.f32 1.4214138, %v1272_v17  ;;  %v1811_v6 = vpop.eup %1810  ;;  %v1389_v18 = vmul.f32 0.5, %v2972_v58  ;;  %v1390_v8 = vmul.f32 0.5, %v2981_v62 }
 0x327   :  { %v1257_v35 = vmul.f32 1.0614054, %v3151_v15  ;;  %v1287_v44 = vmul.f32 %v1279_v26, %v3135_v25  ;;  %v1395_v29 = vmul.f32 %v1387_v59, %v1379_v52  ;;  %v1396_v31 = vmul.f32 %v1388_v38, %v1380_v54 }
 0x328   :  { %v1258_v45 = vmul.f32 1.0614054, %v3153_v57  ;;  %v1288_v41 = vmul.f32 %v1280_v49, %v3138_v55  ;;  %v1397_v60 = vmul.f32 %v1389_v18, %v1381_v28  ;;  %v1398_v40 = vmul.f32 %v1390_v8, %v1382_v48 }
 0x329   :  { %v1265_v14 = vadd.f32 -1.4531521, %v1257_v35  ;;  %v1295_v32 = vadd.f32 -0.28449672, %v1287_v44  ;;  %v1353_v36 = vmul.f32 1.442695, %v1338_v10  ;;  %v1411_v43 = vcombine.low %v1395_v29, %v1396_v31 }
 0x32a   :  { %v1266_v19 = vadd.f32 -1.4531521, %v1258_v45  ;;  %v1296_v37 = vadd.f32 -0.28449672, %v1288_v41  ;;  %v1412_v2 = vcombine.low %v1397_v60, %v1398_v40  ;;  %1812 = vpow2.f32 %v1351_v16 }
 0x32b   :  { %v1273_v22 = vmul.f32 %v1265_v14, %v3151_v15  ;;  %v1303_v46 = vmul.f32 %v1295_v32, %v3135_v25  ;;  %v1419_v4 = vrot.slane %v1411_v43, %v3360_v5  ;;  %1814 = vpow2.f32 %v1353_v36 }
 0x32c   :  { %v1274_v9 = vmul.f32 %v1266_v19, %v3153_v57  ;;  %v1304_v58 = vmul.f32 %v1296_v37, %v3138_v55  ;;  %v1426_v42 = vrot.slane %v1412_v2, %v3360_v5  ;;  %vm1367_vm3 = vcmp.ge.f32.partialorder %v3074_v63, 0.0 }
 0x32d   :  { %v1281_v62 = vadd.f32 1.4214138, %v1273_v22  ;;  %v1311_v24 = vadd.f32 0.2548296, %v1303_v46  ;;  %vm1368_vm4 = vcmp.ge.f32.partialorder %v3078_v61, 0.0  ;;  %v1392_v27 = vmul.f32 0.5, %v3078_v61 }
 0x32e   :  { %v1282_v23 = vadd.f32 1.4214138, %v1274_v9  ;;  %v1312_v30 = vadd.f32 0.2548296, %v1304_v58  ;;  %v1427_v33 = vcombine.low %v1419_v4, %v1426_v42  ;;  %vm1369_vm5 = vcmp.ge.f32.partialorder %v3111_v0, 0.0 }
 0x32f   :  { %v1289_v10 = vmul.f32 %v1281_v62, %v3151_v15  ;;  %v1319_v21 = vmul.f32 %v1311_v24, %v3135_v25  ;;  %v1391_v25 = vmul.f32 0.5, %v3074_v63  ;;  %v1393_v48 = vmul.f32 0.5, %v3111_v0 }
 0x330   :  { %v1290_v50 = vmul.f32 %v1282_v23, %v3153_v57  ;;  %v1320_v51 = vmul.f32 %v1312_v30, %v3138_v55  ;;  %1447 = vst [vmem:[#allocation2] sm:$0xff] %v1427_v33  ;;  %vm1370_vm6 = vcmp.ge.f32.partialorder %v3117_v3, 0.0  ;;  %v1394_v38 = vmul.f32 0.5, %v3117_v3 }
 0x331   :  { %v1297_v12 = vadd.f32 -0.28449672, %v1289_v10  ;;  %v1359_v47 = vmul.f32 %v1809_v11, %v1319_v21 }
 0x332   :  { %v1298_v56 = vadd.f32 -0.28449672, %v1290_v50  ;;  %v1360_v34 = vmul.f32 %v1811_v6, %v1320_v51 }
 0x333   :  { %v1305_v16 = vmul.f32 %v1297_v12, %v3151_v15  ;;  %v1375_v39 = vsub.f32 2.0, %v1359_v47 }
 0x334   :  { %v1306_v20 = vmul.f32 %v1298_v56, %v3153_v57  ;;  %v1376_v7 = vsub.f32 2.0, %v1360_v34  ;;  %v1813_v54 = vpop.eup %1812 }
 0x335   :  { %v1313_v13 = vadd.f32 0.2548296, %v1305_v16  ;;  %v1383_v55 = vsel %vm1367_vm3, %v1375_v39, %v1359_v47  ;;  %v1815_v28 = vpop.eup %1814 }
 0x336   :  { %v1314_v53 = vadd.f32 0.2548296, %v1306_v20  ;;  %v1384_v1 = vsel %vm1368_vm4, %v1376_v7, %v1360_v34  ;;  %v1399_v17 = vmul.f32 %v1391_v25, %v1383_v55 }
 0x337   :  { %v1321_v26 = vmul.f32 %v1313_v13, %v3151_v15  ;;  %v1400_v52 = vmul.f32 %v1392_v27, %v1384_v1 }
 0x338   :  { %v1322_v49 = vmul.f32 %v1314_v53, %v3153_v57 }
 0x339   :  { %v1361_v59 = vmul.f32 %v1813_v54, %v1321_v26  ;;  %v1428_v11 = vcombine.low %v1399_v17, %v1400_v52 }
 0x33a   :  { %v1362_v35 = vmul.f32 %v1815_v28, %v1322_v49 }
 0x33b   :  { %v1377_v63 = vsub.f32 2.0, %v1361_v59  ;;  %v1436_v57 = vrot.slane %v1428_v11, %v3360_v5 }
 0x33c   :  { %v1378_v44 = vsub.f32 2.0, %v1362_v35 }
 0x33d   :  { %v1385_v61 = vsel %vm1369_vm5, %v1377_v63, %v1361_v59 }
 0x33e   :  { %v1386_v15 = vsel %vm1370_vm6, %v1378_v44, %v1362_v35  ;;  %v1401_v6 = vmul.f32 %v1393_v48, %v1385_v61 }
 0x33f   :  { %v1402_v45 = vmul.f32 %v1394_v38, %v1386_v15 }
 0x341   :  { %v1429_v41 = vcombine.low %v1401_v6, %v1402_v45 }
 0x343   :  { %v1443_v18 = vrot.slane %v1429_v41, %v3360_v5 }
 0x345   :  { %v1444_v8 = vcombine.low %v1436_v57, %v1443_v18 }
 0x347   :  { %1448 = vst [vmem:[#allocation2 + $0x8] sm:$0xff] %v1444_v8 }
 0x348   :  { %1827 = shalt.err (!%p1824_p4)
}
 0x349   :  { %s1828_s27 = scalar_lea.hbm %s3201_s2, 256 }
 0x34a   :  { %p1829_p5 = scmp.ne.s32.totalorder %s3201_s2, %s1828_s27  ;;  %p1832_p6 = scmp.lt.u32.totalorder %s1828_s27, %s3201_s2 }
 0x34c   :  { %p1834_p7 = pnand %p1832_p6, %p1829_p5 }
 0x34e   :  { %1837 = shalt.err (!%p1834_p7)
}
 0x34f   :  { %1458 = dma.vmem_to_hbm [thread:$0]  %s1456_s23, 256, %s3201_s2, [#allocation3]  }
 0x350   :  { %1838 = dma.done.wait [#allocation3], 256  }
 0x351   :  { %1839 = vsyncadd [#allocation3], 4294967040 }
 0x352   :  { %1462 = vsyncpa [#allocation3], 1 }

</bundles_post_ra>
